<compile_context>
chip_gen: v7x
topology: tpu7x:2x2x1
jax: 0.10.0
libtpu: 0.0.40
codegen_flags: <defaults>
</compile_context>

<pallas_src>
import functools

import jax
import jax.numpy as jnp
from jax.experimental import pallas as pl
from jax.experimental.pallas import tpu as pltpu


# ---------------------------------------------------------------------------
# Fused Pallas kernel: stacked LSTM + FC head, single invocation (no grid)
# ---------------------------------------------------------------------------
def fused_lstm_kernel(*refs, num_layers, num_fc, batch, seq_len, hidden):
    """refs layout (all whole-array VMEM blocks, ~100 KB total):
         [ x (T*B, I) time-major,
           (wih_t (in,4H), whh_t (H,4H), bias (1,4H)) * num_layers,
           (w (in,out), b (1,out)) * num_fc,
           out (B, out_size) ]
    """
    x_ref = refs[0]
    lstm_refs = refs[1:1 + 3 * num_layers]
    fc_refs = refs[1 + 3 * num_layers:1 + 3 * num_layers + 2 * num_fc]
    out_ref = refs[1 + 3 * num_layers + 2 * num_fc]

    B, T, H = batch, seq_len, hidden

    # Lane mask / pre-scale for the single full-width activation trick.
    # Hoisted: built once, reused by every unrolled step of every layer.
    lane = jax.lax.broadcasted_iota(jnp.int32, (B, 4 * H), 1)
    is_g = jnp.logical_and(lane >= 2 * H, lane < 3 * H)          # tanh (g) lanes
    pre_scale = jnp.where(is_g, 1.0, 0.5).astype(jnp.float32)    # x/2 for sigmoid lanes

    seq_in = x_ref[...]                      # (T*B, in), time-major flat
    h = None
    for layer in range(num_layers):
        wih_ref, whh_ref, b_ref = lstm_refs[3 * layer:3 * layer + 3]
        # Single-pass bf16 MXU inputs; accumulation and gate math stay f32.
        wih = wih_ref[...].astype(jnp.bfloat16)
        whh = whh_ref[...].astype(jnp.bfloat16)
        bias = b_ref[...]

        # Hoisted input projection for ALL timesteps: one batched MXU matmul
        # per layer; result stays vreg-resident, sliced with static
        # sublane-aligned slices inside the unrolled recurrence.
        xg = jnp.dot(seq_in.astype(jnp.bfloat16), wih,
                     preferred_element_type=jnp.float32) + bias   # (T*B, 4H)

        h = jnp.zeros((B, H), jnp.float32)
        c = jnp.zeros((B, H), jnp.float32)
        hs = []
        last_layer = layer == num_layers - 1

        for t in range(T):
            # Only the tiny h @ W_hh matmul sits on the serial per-step path.
            gates = xg[t * B:(t + 1) * B, :] + jnp.dot(
                h.astype(jnp.bfloat16), whh, preferred_element_type=jnp.float32)
            # ONE full-width EUP push over the whole (B, 4H) tile:
            #   sigmoid(x) = 0.5 * tanh(x / 2) + 0.5 on the i/f/o lanes,
            #   tanh(x) directly on the g lanes.
            tfull = jnp.tanh(gates * pre_scale)
            act = jnp.where(is_g, tfull, 0.5 * tfull + 0.5)
            i_g = act[:, 0 * H:1 * H]
            f_g = act[:, 1 * H:2 * H]
            g_g = act[:, 2 * H:3 * H]
            o_g = act[:, 3 * H:4 * H]
            c = f_g * c + i_g * g_g
            h = o_g * jnp.tanh(c)
            if not last_layer:
                hs.append(h)
        if not last_layer:
            # Next layer's input sequence; stays in vregs (no scratch store).
            seq_in = jnp.concatenate(hs, axis=0)   # (T*B, H)

    # FC head on the final hidden state only (lstm_out[-1]); f32 tail, shapes
    # pre-padded to 32 host-side so these matmuls/ReLUs are lane/sublane clean.
    hfc = h
    for j in range(num_fc):
        w_ref, fb_ref = fc_refs[2 * j], fc_refs[2 * j + 1]
        hfc = jnp.dot(hfc, w_ref[...], preferred_element_type=jnp.float32) + fb_ref[...]
        if j < num_fc - 1:
            hfc = jnp.maximum(hfc, 0.0)
    out_ref[...] = hfc.astype(out_ref.dtype)


# ---------------------------------------------------------------------------
# Wrapper: single pallas_call; the time-major flatten is marked fusible into
# the kernel's first input so XLA need not materialize it separately.
# ---------------------------------------------------------------------------
def _lstm_model_forward(x, lstm_params, fc_params):
    """Replicates LSTM.forward: x (B, T, I) -> squeeze((B, out_size))."""
    B, T, I = x.shape
    H = lstm_params[0][1].shape[0]
    out_size = fc_params[-1][0].shape[1]
    num_layers = len(lstm_params)
    num_fc = len(fc_params)

    # (B, T, I) -> time-major flat (T*B, I).  allow_input_fusion[0]=True lets
    # XLA fuse this producer into the pallas_call input instead of emitting a
    # separate op + HBM round-trip.
    x_tm = jnp.transpose(x, (1, 0, 2)).reshape(T * B, I)

    args = [x_tm]
    for p in lstm_params:
        args.extend(p)
    for p in fc_params:
        args.extend(p)
    n_args = len(args)

    kernel = functools.partial(
        fused_lstm_kernel,
        num_layers=num_layers, num_fc=num_fc, batch=B, seq_len=T, hidden=H)

    vmem = pltpu.MemorySpace.VMEM
    fc_out = pl.pallas_call(
        kernel,
        out_shape=jax.ShapeDtypeStruct((B, out_size), jnp.float32),
        in_specs=[pl.BlockSpec(memory_space=vmem) for _ in range(n_args)],
        out_specs=pl.BlockSpec(memory_space=vmem),
        compiler_params=pltpu.CompilerParams(
            allow_input_fusion=[True] + [False] * (n_args - 1)),
    )(*args)
    return jnp.squeeze(fc_out)  # torch.squeeze(fc_out)


lstm_model_forward = jax.jit(_lstm_model_forward)


# ---------------------------------------------------------------------------
# Pure-JAX f32 reference (for correctness check)
# ---------------------------------------------------------------------------
def lstm_model_ref(x, lstm_params, fc_params):
    x_seq = jnp.transpose(x, (1, 0, 2))
    h_seq = x_seq
    for (wih_t, whh_t, b) in lstm_params:
        H = whh_t.shape[0]
        B = h_seq.shape[1]

        def step(carry, x_t):
            h, c = carry
            gates = x_t @ wih_t + h @ whh_t + b
            i = jax.nn.sigmoid(gates[:, :H])
            f = jax.nn.sigmoid(gates[:, H:2 * H])
            g = jnp.tanh(gates[:, 2 * H:3 * H])
            o = jax.nn.sigmoid(gates[:, 3 * H:])
            c = f * c + i * g
            h = o * jnp.tanh(c)
            return (h, c), h

        (_, _), h_seq = jax.lax.scan(
            step, (jnp.zeros((B, H), jnp.float32), jnp.zeros((B, H), jnp.float32)), h_seq
        )
    h = h_seq[-1]
    n_fc = len(fc_params)
    for li, (w, b) in enumerate(fc_params):
        h = h @ w + b
        if li < n_fc - 1:
            h = jnp.maximum(h, 0.0)
    return jnp.squeeze(h)


# ---------------------------------------------------------------------------
# Main
# ---------------------------------------------------------------------------
if __name__ == "__main__":
    # Hyperparameters consistent with the module's __init__
    batch_size = 8
    seq_length = 8
    input_size = 16
    hidden_size = 32
    num_layers = 2
    out_size = 4

    key = jax.random.PRNGKey(0)

    # --- LSTM parameters (PyTorch layout: weight_ih_l{k} is (4H, in)) ---
    lstm_params = []
    in_feat = input_size
    for layer in range(num_layers):
        key, k1, k2, k3, k4 = jax.random.split(key, 5)
        w_ih = jax.random.normal(k1, (4 * hidden_size, in_feat), jnp.float32) * 0.1
        w_hh = jax.random.normal(k2, (4 * hidden_size, hidden_size), jnp.float32) * 0.1
        b_ih = jax.random.normal(k3, (4 * hidden_size,), jnp.float32) * 0.1
        b_hh = jax.random.normal(k4, (4 * hidden_size,), jnp.float32) * 0.1
        # kernel consumes transposed weights and a combined bias row
        lstm_params.append(
            (jnp.transpose(w_ih), jnp.transpose(w_hh), (b_ih + b_hh)[None, :])
        )
        in_feat = hidden_size

    # --- FC head: Linear(H,30) ReLU Linear(30,30) ReLU Linear(30,30) ReLU Linear(30,out)
    # Weights are generated at their true PyTorch sizes and then zero-padded
    # host-side 30 -> 32 (padded activations are identically zero, so the
    # padded model is exactly equivalent to the 30-wide one).
    fc_dims = [(hidden_size, 30), (30, 30), (30, 30), (30, out_size)]
    pad_to = 32
    fc_params = []
    n_fc_layers = len(fc_dims)
    for idx, (fan_in, fan_out) in enumerate(fc_dims):
        key, kw, kb = jax.random.split(key, 3)
        w = jax.random.normal(kw, (fan_out, fan_in), jnp.float32) * 0.1  # torch (out, in)
        b = jax.random.normal(kb, (fan_out,), jnp.float32) * 0.1
        w_t = jnp.transpose(w)          # (fan_in, fan_out)
        b_row = b[None, :]              # (1, fan_out)
        pad_in = (-fan_in) % pad_to
        pad_out = 0 if idx == n_fc_layers - 1 else (-fan_out) % pad_to
        if pad_in or pad_out:
            w_t = jnp.pad(w_t, ((0, pad_in), (0, pad_out)))
            b_row = jnp.pad(b_row, ((0, 0), (0, pad_out)))
        fc_params.append((w_t, b_row))

    # --- input: (batch, seq, input_size), as forward() expects before transpose(0,1) ---
    key, kx = jax.random.split(key)
    x = jax.random.normal(kx, (batch_size, seq_length, input_size), jnp.float32)

    out = lstm_model_forward(x, lstm_params, fc_params)
    out = jax.block_until_ready(out)

    ref = jax.block_until_ready(lstm_model_ref(x, lstm_params, fc_params))
    assert out.shape == (batch_size, out_size), out.shape
    # bf16 MXU inputs on the LSTM matmuls (f32 accumulation) -> relaxed tolerance.
    assert jnp.allclose(out, ref, atol=2e-2, rtol=2e-2), (out, ref)

    print("KERNEL_OK")
</pallas_src>

<mosaic_0001>
module attributes {stable_mosaic.version = 11 : i64} {
  func.func @fused_lstm_kernel(%arg0: memref<64x16xf32, #tpu.memory_space<vmem>>, %arg1: memref<16x128xf32, #tpu.memory_space<vmem>>, %arg2: memref<32x128xf32, #tpu.memory_space<vmem>>, %arg3: memref<1x128xf32, #tpu.memory_space<vmem>>, %arg4: memref<32x128xf32, #tpu.memory_space<vmem>>, %arg5: memref<32x128xf32, #tpu.memory_space<vmem>>, %arg6: memref<1x128xf32, #tpu.memory_space<vmem>>, %arg7: memref<32x32xf32, #tpu.memory_space<vmem>>, %arg8: memref<1x32xf32, #tpu.memory_space<vmem>>, %arg9: memref<32x32xf32, #tpu.memory_space<vmem>>, %arg10: memref<1x32xf32, #tpu.memory_space<vmem>>, %arg11: memref<32x32xf32, #tpu.memory_space<vmem>>, %arg12: memref<1x32xf32, #tpu.memory_space<vmem>>, %arg13: memref<32x4xf32, #tpu.memory_space<vmem>>, %arg14: memref<1x4xf32, #tpu.memory_space<vmem>>, %arg15: memref<8x4xf32, #tpu.memory_space<vmem>>) attributes {dimension_semantics = [], scalar_prefetch = 0 : i64, scratch_operands = 0 : i64, tpu.core_type = #tpu.core_type<tc>} {
    %0 = tpu.iota {dimensions = array<i32: 1>} : vector<8x128xi32>
    %c64_i32 = arith.constant 64 : i32
    %1 = vector.broadcast %c64_i32 : i32 to vector<8x128xi32>
    %2 = arith.cmpi sge, %0, %1 : vector<8x128xi32>
    %c96_i32 = arith.constant 96 : i32
    %3 = vector.broadcast %c96_i32 : i32 to vector<8x128xi32>
    %4 = arith.cmpi slt, %0, %3 : vector<8x128xi32>
    %5 = arith.andi %2, %4 : vector<8x128xi1>
    %cst = arith.constant 1.000000e+00 : f32
    %cst_0 = arith.constant 5.000000e-01 : f32
    %6 = vector.broadcast %cst : f32 to vector<8x128xf32>
    %7 = vector.broadcast %cst_0 : f32 to vector<8x128xf32>
    %8 = arith.select %5, %6, %7 : vector<8x128xi1>, vector<8x128xf32>
    %c0 = arith.constant 0 : index
    %c0_1 = arith.constant 0 : index
    %9 = vector.load %arg0[%c0, %c0_1] : memref<64x16xf32, #tpu.memory_space<vmem>>, vector<64x16xf32>
    %c0_2 = arith.constant 0 : index
    %c0_3 = arith.constant 0 : index
    %10 = vector.load %arg1[%c0_2, %c0_3] : memref<16x128xf32, #tpu.memory_space<vmem>>, vector<16x128xf32>
    %11 = arith.truncf %10 : vector<16x128xf32> to vector<16x128xbf16>
    %c0_4 = arith.constant 0 : index
    %c0_5 = arith.constant 0 : index
    %12 = vector.load %arg2[%c0_4, %c0_5] : memref<32x128xf32, #tpu.memory_space<vmem>>, vector<32x128xf32>
    %13 = arith.truncf %12 : vector<32x128xf32> to vector<32x128xbf16>
    %c0_6 = arith.constant 0 : index
    %c0_7 = arith.constant 0 : index
    %14 = vector.load %arg3[%c0_6, %c0_7] : memref<1x128xf32, #tpu.memory_space<vmem>>, vector<1x128xf32>
    %15 = arith.truncf %9 : vector<64x16xf32> to vector<64x16xbf16>
    %cst_8 = arith.constant dense<0.000000e+00> : vector<64x128xf32>
    %16 = tpu.matmul %15, %11, %cst_8 {dimension_numbers = #tpu.dot_dimension_numbers<[1], [0], [0], [1], [0, 0, 1, 1], [], []>} : vector<64x16xbf16>, vector<16x128xbf16>, vector<64x128xf32> -> vector<64x128xf32>
    %17 = vector.broadcast %14 : vector<1x128xf32> to vector<64x128xf32>
    %18 = arith.addf %16, %17 : vector<64x128xf32>
    %cst_9 = arith.constant 0.000000e+00 : f32
    %19 = vector.broadcast %cst_9 : f32 to vector<8x32xf32>
    %cst_10 = arith.constant 0.000000e+00 : f32
    %20 = vector.broadcast %cst_10 : f32 to vector<8x32xf32>
    %21 = vector.extract_strided_slice %18 {offsets = [0, 0], sizes = [8, 128], strides = [1, 1]} : vector<64x128xf32> to vector<8x128xf32>
    %22 = arith.truncf %19 : vector<8x32xf32> to vector<8x32xbf16>
    %cst_11 = arith.constant dense<0.000000e+00> : vector<8x128xf32>
    %23 = tpu.matmul %22, %13, %cst_11 {dimension_numbers = #tpu.dot_dimension_numbers<[1], [0], [0], [1], [0, 0, 1, 1], [], []>} : vector<8x32xbf16>, vector<32x128xbf16>, vector<8x128xf32> -> vector<8x128xf32>
    %24 = arith.addf %21, %23 : vector<8x128xf32>
    %25 = arith.mulf %24, %8 : vector<8x128xf32>
    %26 = math.tanh %25 : vector<8x128xf32>
    %cst_12 = arith.constant 5.000000e-01 : f32
    %27 = vector.broadcast %cst_12 : f32 to vector<8x128xf32>
    %28 = arith.mulf %27, %26 : vector<8x128xf32>
    %cst_13 = arith.constant 5.000000e-01 : f32
    %29 = vector.broadcast %cst_13 : f32 to vector<8x128xf32>
    %30 = arith.addf %28, %29 : vector<8x128xf32>
    %31 = arith.select %5, %26, %30 : vector<8x128xi1>, vector<8x128xf32>
    %32 = vector.extract_strided_slice %31 {offsets = [0, 0], sizes = [8, 32], strides = [1, 1]} : vector<8x128xf32> to vector<8x32xf32>
    %33 = vector.extract_strided_slice %31 {offsets = [0, 32], sizes = [8, 32], strides = [1, 1]} : vector<8x128xf32> to vector<8x32xf32>
    %34 = vector.extract_strided_slice %31 {offsets = [0, 64], sizes = [8, 32], strides = [1, 1]} : vector<8x128xf32> to vector<8x32xf32>
    %35 = vector.extract_strided_slice %31 {offsets = [0, 96], sizes = [8, 32], strides = [1, 1]} : vector<8x128xf32> to vector<8x32xf32>
    %36 = arith.mulf %33, %20 : vector<8x32xf32>
    %37 = arith.mulf %32, %34 : vector<8x32xf32>
    %38 = arith.addf %36, %37 : vector<8x32xf32>
    %39 = math.tanh %38 : vector<8x32xf32>
    %40 = arith.mulf %35, %39 : vector<8x32xf32>
    %41 = vector.extract_strided_slice %18 {offsets = [8, 0], sizes = [8, 128], strides = [1, 1]} : vector<64x128xf32> to vector<8x128xf32>
    %42 = arith.truncf %40 : vector<8x32xf32> to vector<8x32xbf16>
    %cst_14 = arith.constant dense<0.000000e+00> : vector<8x128xf32>
    %43 = tpu.matmul %42, %13, %cst_14 {dimension_numbers = #tpu.dot_dimension_numbers<[1], [0], [0], [1], [0, 0, 1, 1], [], []>} : vector<8x32xbf16>, vector<32x128xbf16>, vector<8x128xf32> -> vector<8x128xf32>
    %44 = arith.addf %41, %43 : vector<8x128xf32>
    %45 = arith.mulf %44, %8 : vector<8x128xf32>
    %46 = math.tanh %45 : vector<8x128xf32>
    %cst_15 = arith.constant 5.000000e-01 : f32
    %47 = vector.broadcast %cst_15 : f32 to vector<8x128xf32>
    %48 = arith.mulf %47, %46 : vector<8x128xf32>
    %cst_16 = arith.constant 5.000000e-01 : f32
    %49 = vector.broadcast %cst_16 : f32 to vector<8x128xf32>
    %50 = arith.addf %48, %49 : vector<8x128xf32>
    %51 = arith.select %5, %46, %50 : vector<8x128xi1>, vector<8x128xf32>
    %52 = vector.extract_strided_slice %51 {offsets = [0, 0], sizes = [8, 32], strides = [1, 1]} : vector<8x128xf32> to vector<8x32xf32>
    %53 = vector.extract_strided_slice %51 {offsets = [0, 32], sizes = [8, 32], strides = [1, 1]} : vector<8x128xf32> to vector<8x32xf32>
    %54 = vector.extract_strided_slice %51 {offsets = [0, 64], sizes = [8, 32], strides = [1, 1]} : vector<8x128xf32> to vector<8x32xf32>
    %55 = vector.extract_strided_slice %51 {offsets = [0, 96], sizes = [8, 32], strides = [1, 1]} : vector<8x128xf32> to vector<8x32xf32>
    %56 = arith.mulf %53, %38 : vector<8x32xf32>
    %57 = arith.mulf %52, %54 : vector<8x32xf32>
    %58 = arith.addf %56, %57 : vector<8x32xf32>
    %59 = math.tanh %58 : vector<8x32xf32>
    %60 = arith.mulf %55, %59 : vector<8x32xf32>
    %61 = vector.extract_strided_slice %18 {offsets = [16, 0], sizes = [8, 128], strides = [1, 1]} : vector<64x128xf32> to vector<8x128xf32>
    %62 = arith.truncf %60 : vector<8x32xf32> to vector<8x32xbf16>
    %cst_17 = arith.constant dense<0.000000e+00> : vector<8x128xf32>
    %63 = tpu.matmul %62, %13, %cst_17 {dimension_numbers = #tpu.dot_dimension_numbers<[1], [0], [0], [1], [0, 0, 1, 1], [], []>} : vector<8x32xbf16>, vector<32x128xbf16>, vector<8x128xf32> -> vector<8x128xf32>
    %64 = arith.addf %61, %63 : vector<8x128xf32>
    %65 = arith.mulf %64, %8 : vector<8x128xf32>
    %66 = math.tanh %65 : vector<8x128xf32>
    %cst_18 = arith.constant 5.000000e-01 : f32
    %67 = vector.broadcast %cst_18 : f32 to vector<8x128xf32>
    %68 = arith.mulf %67, %66 : vector<8x128xf32>
    %cst_19 = arith.constant 5.000000e-01 : f32
    %69 = vector.broadcast %cst_19 : f32 to vector<8x128xf32>
    %70 = arith.addf %68, %69 : vector<8x128xf32>
    %71 = arith.select %5, %66, %70 : vector<8x128xi1>, vector<8x128xf32>
    %72 = vector.extract_strided_slice %71 {offsets = [0, 0], sizes = [8, 32], strides = [1, 1]} : vector<8x128xf32> to vector<8x32xf32>
    %73 = vector.extract_strided_slice %71 {offsets = [0, 32], sizes = [8, 32], strides = [1, 1]} : vector<8x128xf32> to vector<8x32xf32>
    %74 = vector.extract_strided_slice %71 {offsets = [0, 64], sizes = [8, 32], strides = [1, 1]} : vector<8x128xf32> to vector<8x32xf32>
    %75 = vector.extract_strided_slice %71 {offsets = [0, 96], sizes = [8, 32], strides = [1, 1]} : vector<8x128xf32> to vector<8x32xf32>
    %76 = arith.mulf %73, %58 : vector<8x32xf32>
    %77 = arith.mulf %72, %74 : vector<8x32xf32>
    %78 = arith.addf %76, %77 : vector<8x32xf32>
    %79 = math.tanh %78 : vector<8x32xf32>
    %80 = arith.mulf %75, %79 : vector<8x32xf32>
    %81 = vector.extract_strided_slice %18 {offsets = [24, 0], sizes = [8, 128], strides = [1, 1]} : vector<64x128xf32> to vector<8x128xf32>
    %82 = arith.truncf %80 : vector<8x32xf32> to vector<8x32xbf16>
    %cst_20 = arith.constant dense<0.000000e+00> : vector<8x128xf32>
    %83 = tpu.matmul %82, %13, %cst_20 {dimension_numbers = #tpu.dot_dimension_numbers<[1], [0], [0], [1], [0, 0, 1, 1], [], []>} : vector<8x32xbf16>, vector<32x128xbf16>, vector<8x128xf32> -> vector<8x128xf32>
    %84 = arith.addf %81, %83 : vector<8x128xf32>
    %85 = arith.mulf %84, %8 : vector<8x128xf32>
    %86 = math.tanh %85 : vector<8x128xf32>
    %cst_21 = arith.constant 5.000000e-01 : f32
    %87 = vector.broadcast %cst_21 : f32 to vector<8x128xf32>
    %88 = arith.mulf %87, %86 : vector<8x128xf32>
    %cst_22 = arith.constant 5.000000e-01 : f32
    %89 = vector.broadcast %cst_22 : f32 to vector<8x128xf32>
    %90 = arith.addf %88, %89 : vector<8x128xf32>
    %91 = arith.select %5, %86, %90 : vector<8x128xi1>, vector<8x128xf32>
    %92 = vector.extract_strided_slice %91 {offsets = [0, 0], sizes = [8, 32], strides = [1, 1]} : vector<8x128xf32> to vector<8x32xf32>
    %93 = vector.extract_strided_slice %91 {offsets = [0, 32], sizes = [8, 32], strides = [1, 1]} : vector<8x128xf32> to vector<8x32xf32>
    %94 = vector.extract_strided_slice %91 {offsets = [0, 64], sizes = [8, 32], strides = [1, 1]} : vector<8x128xf32> to vector<8x32xf32>
    %95 = vector.extract_strided_slice %91 {offsets = [0, 96], sizes = [8, 32], strides = [1, 1]} : vector<8x128xf32> to vector<8x32xf32>
    %96 = arith.mulf %93, %78 : vector<8x32xf32>
    %97 = arith.mulf %92, %94 : vector<8x32xf32>
    %98 = arith.addf %96, %97 : vector<8x32xf32>
    %99 = math.tanh %98 : vector<8x32xf32>
    %100 = arith.mulf %95, %99 : vector<8x32xf32>
    %101 = vector.extract_strided_slice %18 {offsets = [32, 0], sizes = [8, 128], strides = [1, 1]} : vector<64x128xf32> to vector<8x128xf32>
    %102 = arith.truncf %100 : vector<8x32xf32> to vector<8x32xbf16>
    %cst_23 = arith.constant dense<0.000000e+00> : vector<8x128xf32>
    %103 = tpu.matmul %102, %13, %cst_23 {dimension_numbers = #tpu.dot_dimension_numbers<[1], [0], [0], [1], [0, 0, 1, 1], [], []>} : vector<8x32xbf16>, vector<32x128xbf16>, vector<8x128xf32> -> vector<8x128xf32>
    %104 = arith.addf %101, %103 : vector<8x128xf32>
    %105 = arith.mulf %104, %8 : vector<8x128xf32>
    %106 = math.tanh %105 : vector<8x128xf32>
    %cst_24 = arith.constant 5.000000e-01 : f32
    %107 = vector.broadcast %cst_24 : f32 to vector<8x128xf32>
    %108 = arith.mulf %107, %106 : vector<8x128xf32>
    %cst_25 = arith.constant 5.000000e-01 : f32
    %109 = vector.broadcast %cst_25 : f32 to vector<8x128xf32>
    %110 = arith.addf %108, %109 : vector<8x128xf32>
    %111 = arith.select %5, %106, %110 : vector<8x128xi1>, vector<8x128xf32>
    %112 = vector.extract_strided_slice %111 {offsets = [0, 0], sizes = [8, 32], strides = [1, 1]} : vector<8x128xf32> to vector<8x32xf32>
    %113 = vector.extract_strided_slice %111 {offsets = [0, 32], sizes = [8, 32], strides = [1, 1]} : vector<8x128xf32> to vector<8x32xf32>
    %114 = vector.extract_strided_slice %111 {offsets = [0, 64], sizes = [8, 32], strides = [1, 1]} : vector<8x128xf32> to vector<8x32xf32>
    %115 = vector.extract_strided_slice %111 {offsets = [0, 96], sizes = [8, 32], strides = [1, 1]} : vector<8x128xf32> to vector<8x32xf32>
    %116 = arith.mulf %113, %98 : vector<8x32xf32>
    %117 = arith.mulf %112, %114 : vector<8x32xf32>
    %118 = arith.addf %116, %117 : vector<8x32xf32>
    %119 = math.tanh %118 : vector<8x32xf32>
    %120 = arith.mulf %115, %119 : vector<8x32xf32>
    %121 = vector.extract_strided_slice %18 {offsets = [40, 0], sizes = [8, 128], strides = [1, 1]} : vector<64x128xf32> to vector<8x128xf32>
    %122 = arith.truncf %120 : vector<8x32xf32> to vector<8x32xbf16>
    %cst_26 = arith.constant dense<0.000000e+00> : vector<8x128xf32>
    %123 = tpu.matmul %122, %13, %cst_26 {dimension_numbers = #tpu.dot_dimension_numbers<[1], [0], [0], [1], [0, 0, 1, 1], [], []>} : vector<8x32xbf16>, vector<32x128xbf16>, vector<8x128xf32> -> vector<8x128xf32>
    %124 = arith.addf %121, %123 : vector<8x128xf32>
    %125 = arith.mulf %124, %8 : vector<8x128xf32>
    %126 = math.tanh %125 : vector<8x128xf32>
    %cst_27 = arith.constant 5.000000e-01 : f32
    %127 = vector.broadcast %cst_27 : f32 to vector<8x128xf32>
    %128 = arith.mulf %127, %126 : vector<8x128xf32>
    %cst_28 = arith.constant 5.000000e-01 : f32
    %129 = vector.broadcast %cst_28 : f32 to vector<8x128xf32>
    %130 = arith.addf %128, %129 : vector<8x128xf32>
    %131 = arith.select %5, %126, %130 : vector<8x128xi1>, vector<8x128xf32>
    %132 = vector.extract_strided_slice %131 {offsets = [0, 0], sizes = [8, 32], strides = [1, 1]} : vector<8x128xf32> to vector<8x32xf32>
    %133 = vector.extract_strided_slice %131 {offsets = [0, 32], sizes = [8, 32], strides = [1, 1]} : vector<8x128xf32> to vector<8x32xf32>
    %134 = vector.extract_strided_slice %131 {offsets = [0, 64], sizes = [8, 32], strides = [1, 1]} : vector<8x128xf32> to vector<8x32xf32>
    %135 = vector.extract_strided_slice %131 {offsets = [0, 96], sizes = [8, 32], strides = [1, 1]} : vector<8x128xf32> to vector<8x32xf32>
    %136 = arith.mulf %133, %118 : vector<8x32xf32>
    %137 = arith.mulf %132, %134 : vector<8x32xf32>
    %138 = arith.addf %136, %137 : vector<8x32xf32>
    %139 = math.tanh %138 : vector<8x32xf32>
    %140 = arith.mulf %135, %139 : vector<8x32xf32>
    %141 = vector.extract_strided_slice %18 {offsets = [48, 0], sizes = [8, 128], strides = [1, 1]} : vector<64x128xf32> to vector<8x128xf32>
    %142 = arith.truncf %140 : vector<8x32xf32> to vector<8x32xbf16>
    %cst_29 = arith.constant dense<0.000000e+00> : vector<8x128xf32>
    %143 = tpu.matmul %142, %13, %cst_29 {dimension_numbers = #tpu.dot_dimension_numbers<[1], [0], [0], [1], [0, 0, 1, 1], [], []>} : vector<8x32xbf16>, vector<32x128xbf16>, vector<8x128xf32> -> vector<8x128xf32>
    %144 = arith.addf %141, %143 : vector<8x128xf32>
    %145 = arith.mulf %144, %8 : vector<8x128xf32>
    %146 = math.tanh %145 : vector<8x128xf32>
    %cst_30 = arith.constant 5.000000e-01 : f32
    %147 = vector.broadcast %cst_30 : f32 to vector<8x128xf32>
    %148 = arith.mulf %147, %146 : vector<8x128xf32>
    %cst_31 = arith.constant 5.000000e-01 : f32
    %149 = vector.broadcast %cst_31 : f32 to vector<8x128xf32>
    %150 = arith.addf %148, %149 : vector<8x128xf32>
    %151 = arith.select %5, %146, %150 : vector<8x128xi1>, vector<8x128xf32>
    %152 = vector.extract_strided_slice %151 {offsets = [0, 0], sizes = [8, 32], strides = [1, 1]} : vector<8x128xf32> to vector<8x32xf32>
    %153 = vector.extract_strided_slice %151 {offsets = [0, 32], sizes = [8, 32], strides = [1, 1]} : vector<8x128xf32> to vector<8x32xf32>
    %154 = vector.extract_strided_slice %151 {offsets = [0, 64], sizes = [8, 32], strides = [1, 1]} : vector<8x128xf32> to vector<8x32xf32>
    %155 = vector.extract_strided_slice %151 {offsets = [0, 96], sizes = [8, 32], strides = [1, 1]} : vector<8x128xf32> to vector<8x32xf32>
    %156 = arith.mulf %153, %138 : vector<8x32xf32>
    %157 = arith.mulf %152, %154 : vector<8x32xf32>
    %158 = arith.addf %156, %157 : vector<8x32xf32>
    %159 = math.tanh %158 : vector<8x32xf32>
    %160 = arith.mulf %155, %159 : vector<8x32xf32>
    %161 = vector.extract_strided_slice %18 {offsets = [56, 0], sizes = [8, 128], strides = [1, 1]} : vector<64x128xf32> to vector<8x128xf32>
    %162 = arith.truncf %160 : vector<8x32xf32> to vector<8x32xbf16>
    %cst_32 = arith.constant dense<0.000000e+00> : vector<8x128xf32>
    %163 = tpu.matmul %162, %13, %cst_32 {dimension_numbers = #tpu.dot_dimension_numbers<[1], [0], [0], [1], [0, 0, 1, 1], [], []>} : vector<8x32xbf16>, vector<32x128xbf16>, vector<8x128xf32> -> vector<8x128xf32>
    %164 = arith.addf %161, %163 : vector<8x128xf32>
    %165 = arith.mulf %164, %8 : vector<8x128xf32>
    %166 = math.tanh %165 : vector<8x128xf32>
    %cst_33 = arith.constant 5.000000e-01 : f32
    %167 = vector.broadcast %cst_33 : f32 to vector<8x128xf32>
    %168 = arith.mulf %167, %166 : vector<8x128xf32>
    %cst_34 = arith.constant 5.000000e-01 : f32
    %169 = vector.broadcast %cst_34 : f32 to vector<8x128xf32>
    %170 = arith.addf %168, %169 : vector<8x128xf32>
    %171 = arith.select %5, %166, %170 : vector<8x128xi1>, vector<8x128xf32>
    %172 = vector.extract_strided_slice %171 {offsets = [0, 0], sizes = [8, 32], strides = [1, 1]} : vector<8x128xf32> to vector<8x32xf32>
    %173 = vector.extract_strided_slice %171 {offsets = [0, 32], sizes = [8, 32], strides = [1, 1]} : vector<8x128xf32> to vector<8x32xf32>
    %174 = vector.extract_strided_slice %171 {offsets = [0, 64], sizes = [8, 32], strides = [1, 1]} : vector<8x128xf32> to vector<8x32xf32>
    %175 = vector.extract_strided_slice %171 {offsets = [0, 96], sizes = [8, 32], strides = [1, 1]} : vector<8x128xf32> to vector<8x32xf32>
    %176 = arith.mulf %173, %158 : vector<8x32xf32>
    %177 = arith.mulf %172, %174 : vector<8x32xf32>
    %178 = arith.addf %176, %177 : vector<8x32xf32>
    %179 = math.tanh %178 : vector<8x32xf32>
    %180 = arith.mulf %175, %179 : vector<8x32xf32>
    %181 = tpu.concatenate %40, %60, %80, %100, %120, %140, %160, %180 in 0 : vector<8x32xf32>, vector<8x32xf32>, vector<8x32xf32>, vector<8x32xf32>, vector<8x32xf32>, vector<8x32xf32>, vector<8x32xf32>, vector<8x32xf32> -> vector<64x32xf32>
    %c0_35 = arith.constant 0 : index
    %c0_36 = arith.constant 0 : index
    %182 = vector.load %arg4[%c0_35, %c0_36] : memref<32x128xf32, #tpu.memory_space<vmem>>, vector<32x128xf32>
    %183 = arith.truncf %182 : vector<32x128xf32> to vector<32x128xbf16>
    %c0_37 = arith.constant 0 : index
    %c0_38 = arith.constant 0 : index
    %184 = vector.load %arg5[%c0_37, %c0_38] : memref<32x128xf32, #tpu.memory_space<vmem>>, vector<32x128xf32>
    %185 = arith.truncf %184 : vector<32x128xf32> to vector<32x128xbf16>
    %c0_39 = arith.constant 0 : index
    %c0_40 = arith.constant 0 : index
    %186 = vector.load %arg6[%c0_39, %c0_40] : memref<1x128xf32, #tpu.memory_space<vmem>>, vector<1x128xf32>
    %187 = arith.truncf %181 : vector<64x32xf32> to vector<64x32xbf16>
    %cst_41 = arith.constant dense<0.000000e+00> : vector<64x128xf32>
    %188 = tpu.matmul %187, %183, %cst_41 {dimension_numbers = #tpu.dot_dimension_numbers<[1], [0], [0], [1], [0, 0, 1, 1], [], []>} : vector<64x32xbf16>, vector<32x128xbf16>, vector<64x128xf32> -> vector<64x128xf32>
    %189 = vector.broadcast %186 : vector<1x128xf32> to vector<64x128xf32>
    %190 = arith.addf %188, %189 : vector<64x128xf32>
    %cst_42 = arith.constant 0.000000e+00 : f32
    %191 = vector.broadcast %cst_42 : f32 to vector<8x32xf32>
    %cst_43 = arith.constant 0.000000e+00 : f32
    %192 = vector.broadcast %cst_43 : f32 to vector<8x32xf32>
    %193 = vector.extract_strided_slice %190 {offsets = [0, 0], sizes = [8, 128], strides = [1, 1]} : vector<64x128xf32> to vector<8x128xf32>
    %194 = arith.truncf %191 : vector<8x32xf32> to vector<8x32xbf16>
    %cst_44 = arith.constant dense<0.000000e+00> : vector<8x128xf32>
    %195 = tpu.matmul %194, %185, %cst_44 {dimension_numbers = #tpu.dot_dimension_numbers<[1], [0], [0], [1], [0, 0, 1, 1], [], []>} : vector<8x32xbf16>, vector<32x128xbf16>, vector<8x128xf32> -> vector<8x128xf32>
    %196 = arith.addf %193, %195 : vector<8x128xf32>
    %197 = arith.mulf %196, %8 : vector<8x128xf32>
    %198 = math.tanh %197 : vector<8x128xf32>
    %cst_45 = arith.constant 5.000000e-01 : f32
    %199 = vector.broadcast %cst_45 : f32 to vector<8x128xf32>
    %200 = arith.mulf %199, %198 : vector<8x128xf32>
    %cst_46 = arith.constant 5.000000e-01 : f32
    %201 = vector.broadcast %cst_46 : f32 to vector<8x128xf32>
    %202 = arith.addf %200, %201 : vector<8x128xf32>
    %203 = arith.select %5, %198, %202 : vector<8x128xi1>, vector<8x128xf32>
    %204 = vector.extract_strided_slice %203 {offsets = [0, 0], sizes = [8, 32], strides = [1, 1]} : vector<8x128xf32> to vector<8x32xf32>
    %205 = vector.extract_strided_slice %203 {offsets = [0, 32], sizes = [8, 32], strides = [1, 1]} : vector<8x128xf32> to vector<8x32xf32>
    %206 = vector.extract_strided_slice %203 {offsets = [0, 64], sizes = [8, 32], strides = [1, 1]} : vector<8x128xf32> to vector<8x32xf32>
    %207 = vector.extract_strided_slice %203 {offsets = [0, 96], sizes = [8, 32], strides = [1, 1]} : vector<8x128xf32> to vector<8x32xf32>
    %208 = arith.mulf %205, %192 : vector<8x32xf32>
    %209 = arith.mulf %204, %206 : vector<8x32xf32>
    %210 = arith.addf %208, %209 : vector<8x32xf32>
    %211 = math.tanh %210 : vector<8x32xf32>
    %212 = arith.mulf %207, %211 : vector<8x32xf32>
    %213 = vector.extract_strided_slice %190 {offsets = [8, 0], sizes = [8, 128], strides = [1, 1]} : vector<64x128xf32> to vector<8x128xf32>
    %214 = arith.truncf %212 : vector<8x32xf32> to vector<8x32xbf16>
    %cst_47 = arith.constant dense<0.000000e+00> : vector<8x128xf32>
    %215 = tpu.matmul %214, %185, %cst_47 {dimension_numbers = #tpu.dot_dimension_numbers<[1], [0], [0], [1], [0, 0, 1, 1], [], []>} : vector<8x32xbf16>, vector<32x128xbf16>, vector<8x128xf32> -> vector<8x128xf32>
    %216 = arith.addf %213, %215 : vector<8x128xf32>
    %217 = arith.mulf %216, %8 : vector<8x128xf32>
    %218 = math.tanh %217 : vector<8x128xf32>
    %cst_48 = arith.constant 5.000000e-01 : f32
    %219 = vector.broadcast %cst_48 : f32 to vector<8x128xf32>
    %220 = arith.mulf %219, %218 : vector<8x128xf32>
    %cst_49 = arith.constant 5.000000e-01 : f32
    %221 = vector.broadcast %cst_49 : f32 to vector<8x128xf32>
    %222 = arith.addf %220, %221 : vector<8x128xf32>
    %223 = arith.select %5, %218, %222 : vector<8x128xi1>, vector<8x128xf32>
    %224 = vector.extract_strided_slice %223 {offsets = [0, 0], sizes = [8, 32], strides = [1, 1]} : vector<8x128xf32> to vector<8x32xf32>
    %225 = vector.extract_strided_slice %223 {offsets = [0, 32], sizes = [8, 32], strides = [1, 1]} : vector<8x128xf32> to vector<8x32xf32>
    %226 = vector.extract_strided_slice %223 {offsets = [0, 64], sizes = [8, 32], strides = [1, 1]} : vector<8x128xf32> to vector<8x32xf32>
    %227 = vector.extract_strided_slice %223 {offsets = [0, 96], sizes = [8, 32], strides = [1, 1]} : vector<8x128xf32> to vector<8x32xf32>
    %228 = arith.mulf %225, %210 : vector<8x32xf32>
    %229 = arith.mulf %224, %226 : vector<8x32xf32>
    %230 = arith.addf %228, %229 : vector<8x32xf32>
    %231 = math.tanh %230 : vector<8x32xf32>
    %232 = arith.mulf %227, %231 : vector<8x32xf32>
    %233 = vector.extract_strided_slice %190 {offsets = [16, 0], sizes = [8, 128], strides = [1, 1]} : vector<64x128xf32> to vector<8x128xf32>
    %234 = arith.truncf %232 : vector<8x32xf32> to vector<8x32xbf16>
    %cst_50 = arith.constant dense<0.000000e+00> : vector<8x128xf32>
    %235 = tpu.matmul %234, %185, %cst_50 {dimension_numbers = #tpu.dot_dimension_numbers<[1], [0], [0], [1], [0, 0, 1, 1], [], []>} : vector<8x32xbf16>, vector<32x128xbf16>, vector<8x128xf32> -> vector<8x128xf32>
    %236 = arith.addf %233, %235 : vector<8x128xf32>
    %237 = arith.mulf %236, %8 : vector<8x128xf32>
    %238 = math.tanh %237 : vector<8x128xf32>
    %cst_51 = arith.constant 5.000000e-01 : f32
    %239 = vector.broadcast %cst_51 : f32 to vector<8x128xf32>
    %240 = arith.mulf %239, %238 : vector<8x128xf32>
    %cst_52 = arith.constant 5.000000e-01 : f32
    %241 = vector.broadcast %cst_52 : f32 to vector<8x128xf32>
    %242 = arith.addf %240, %241 : vector<8x128xf32>
    %243 = arith.select %5, %238, %242 : vector<8x128xi1>, vector<8x128xf32>
    %244 = vector.extract_strided_slice %243 {offsets = [0, 0], sizes = [8, 32], strides = [1, 1]} : vector<8x128xf32> to vector<8x32xf32>
    %245 = vector.extract_strided_slice %243 {offsets = [0, 32], sizes = [8, 32], strides = [1, 1]} : vector<8x128xf32> to vector<8x32xf32>
    %246 = vector.extract_strided_slice %243 {offsets = [0, 64], sizes = [8, 32], strides = [1, 1]} : vector<8x128xf32> to vector<8x32xf32>
    %247 = vector.extract_strided_slice %243 {offsets = [0, 96], sizes = [8, 32], strides = [1, 1]} : vector<8x128xf32> to vector<8x32xf32>
    %248 = arith.mulf %245, %230 : vector<8x32xf32>
    %249 = arith.mulf %244, %246 : vector<8x32xf32>
    %250 = arith.addf %248, %249 : vector<8x32xf32>
    %251 = math.tanh %250 : vector<8x32xf32>
    %252 = arith.mulf %247, %251 : vector<8x32xf32>
    %253 = vector.extract_strided_slice %190 {offsets = [24, 0], sizes = [8, 128], strides = [1, 1]} : vector<64x128xf32> to vector<8x128xf32>
    %254 = arith.truncf %252 : vector<8x32xf32> to vector<8x32xbf16>
    %cst_53 = arith.constant dense<0.000000e+00> : vector<8x128xf32>
    %255 = tpu.matmul %254, %185, %cst_53 {dimension_numbers = #tpu.dot_dimension_numbers<[1], [0], [0], [1], [0, 0, 1, 1], [], []>} : vector<8x32xbf16>, vector<32x128xbf16>, vector<8x128xf32> -> vector<8x128xf32>
    %256 = arith.addf %253, %255 : vector<8x128xf32>
    %257 = arith.mulf %256, %8 : vector<8x128xf32>
    %258 = math.tanh %257 : vector<8x128xf32>
    %cst_54 = arith.constant 5.000000e-01 : f32
    %259 = vector.broadcast %cst_54 : f32 to vector<8x128xf32>
    %260 = arith.mulf %259, %258 : vector<8x128xf32>
    %cst_55 = arith.constant 5.000000e-01 : f32
    %261 = vector.broadcast %cst_55 : f32 to vector<8x128xf32>
    %262 = arith.addf %260, %261 : vector<8x128xf32>
    %263 = arith.select %5, %258, %262 : vector<8x128xi1>, vector<8x128xf32>
    %264 = vector.extract_strided_slice %263 {offsets = [0, 0], sizes = [8, 32], strides = [1, 1]} : vector<8x128xf32> to vector<8x32xf32>
    %265 = vector.extract_strided_slice %263 {offsets = [0, 32], sizes = [8, 32], strides = [1, 1]} : vector<8x128xf32> to vector<8x32xf32>
    %266 = vector.extract_strided_slice %263 {offsets = [0, 64], sizes = [8, 32], strides = [1, 1]} : vector<8x128xf32> to vector<8x32xf32>
    %267 = vector.extract_strided_slice %263 {offsets = [0, 96], sizes = [8, 32], strides = [1, 1]} : vector<8x128xf32> to vector<8x32xf32>
    %268 = arith.mulf %265, %250 : vector<8x32xf32>
    %269 = arith.mulf %264, %266 : vector<8x32xf32>
    %270 = arith.addf %268, %269 : vector<8x32xf32>
    %271 = math.tanh %270 : vector<8x32xf32>
    %272 = arith.mulf %267, %271 : vector<8x32xf32>
    %273 = vector.extract_strided_slice %190 {offsets = [32, 0], sizes = [8, 128], strides = [1, 1]} : vector<64x128xf32> to vector<8x128xf32>
    %274 = arith.truncf %272 : vector<8x32xf32> to vector<8x32xbf16>
    %cst_56 = arith.constant dense<0.000000e+00> : vector<8x128xf32>
    %275 = tpu.matmul %274, %185, %cst_56 {dimension_numbers = #tpu.dot_dimension_numbers<[1], [0], [0], [1], [0, 0, 1, 1], [], []>} : vector<8x32xbf16>, vector<32x128xbf16>, vector<8x128xf32> -> vector<8x128xf32>
    %276 = arith.addf %273, %275 : vector<8x128xf32>
    %277 = arith.mulf %276, %8 : vector<8x128xf32>
    %278 = math.tanh %277 : vector<8x128xf32>
    %cst_57 = arith.constant 5.000000e-01 : f32
    %279 = vector.broadcast %cst_57 : f32 to vector<8x128xf32>
    %280 = arith.mulf %279, %278 : vector<8x128xf32>
    %cst_58 = arith.constant 5.000000e-01 : f32
    %281 = vector.broadcast %cst_58 : f32 to vector<8x128xf32>
    %282 = arith.addf %280, %281 : vector<8x128xf32>
    %283 = arith.select %5, %278, %282 : vector<8x128xi1>, vector<8x128xf32>
    %284 = vector.extract_strided_slice %283 {offsets = [0, 0], sizes = [8, 32], strides = [1, 1]} : vector<8x128xf32> to vector<8x32xf32>
    %285 = vector.extract_strided_slice %283 {offsets = [0, 32], sizes = [8, 32], strides = [1, 1]} : vector<8x128xf32> to vector<8x32xf32>
    %286 = vector.extract_strided_slice %283 {offsets = [0, 64], sizes = [8, 32], strides = [1, 1]} : vector<8x128xf32> to vector<8x32xf32>
    %287 = vector.extract_strided_slice %283 {offsets = [0, 96], sizes = [8, 32], strides = [1, 1]} : vector<8x128xf32> to vector<8x32xf32>
    %288 = arith.mulf %285, %270 : vector<8x32xf32>
    %289 = arith.mulf %284, %286 : vector<8x32xf32>
    %290 = arith.addf %288, %289 : vector<8x32xf32>
    %291 = math.tanh %290 : vector<8x32xf32>
    %292 = arith.mulf %287, %291 : vector<8x32xf32>
    %293 = vector.extract_strided_slice %190 {offsets = [40, 0], sizes = [8, 128], strides = [1, 1]} : vector<64x128xf32> to vector<8x128xf32>
    %294 = arith.truncf %292 : vector<8x32xf32> to vector<8x32xbf16>
    %cst_59 = arith.constant dense<0.000000e+00> : vector<8x128xf32>
    %295 = tpu.matmul %294, %185, %cst_59 {dimension_numbers = #tpu.dot_dimension_numbers<[1], [0], [0], [1], [0, 0, 1, 1], [], []>} : vector<8x32xbf16>, vector<32x128xbf16>, vector<8x128xf32> -> vector<8x128xf32>
    %296 = arith.addf %293, %295 : vector<8x128xf32>
    %297 = arith.mulf %296, %8 : vector<8x128xf32>
    %298 = math.tanh %297 : vector<8x128xf32>
    %cst_60 = arith.constant 5.000000e-01 : f32
    %299 = vector.broadcast %cst_60 : f32 to vector<8x128xf32>
    %300 = arith.mulf %299, %298 : vector<8x128xf32>
    %cst_61 = arith.constant 5.000000e-01 : f32
    %301 = vector.broadcast %cst_61 : f32 to vector<8x128xf32>
    %302 = arith.addf %300, %301 : vector<8x128xf32>
    %303 = arith.select %5, %298, %302 : vector<8x128xi1>, vector<8x128xf32>
    %304 = vector.extract_strided_slice %303 {offsets = [0, 0], sizes = [8, 32], strides = [1, 1]} : vector<8x128xf32> to vector<8x32xf32>
    %305 = vector.extract_strided_slice %303 {offsets = [0, 32], sizes = [8, 32], strides = [1, 1]} : vector<8x128xf32> to vector<8x32xf32>
    %306 = vector.extract_strided_slice %303 {offsets = [0, 64], sizes = [8, 32], strides = [1, 1]} : vector<8x128xf32> to vector<8x32xf32>
    %307 = vector.extract_strided_slice %303 {offsets = [0, 96], sizes = [8, 32], strides = [1, 1]} : vector<8x128xf32> to vector<8x32xf32>
    %308 = arith.mulf %305, %290 : vector<8x32xf32>
    %309 = arith.mulf %304, %306 : vector<8x32xf32>
    %310 = arith.addf %308, %309 : vector<8x32xf32>
    %311 = math.tanh %310 : vector<8x32xf32>
    %312 = arith.mulf %307, %311 : vector<8x32xf32>
    %313 = vector.extract_strided_slice %190 {offsets = [48, 0], sizes = [8, 128], strides = [1, 1]} : vector<64x128xf32> to vector<8x128xf32>
    %314 = arith.truncf %312 : vector<8x32xf32> to vector<8x32xbf16>
    %cst_62 = arith.constant dense<0.000000e+00> : vector<8x128xf32>
    %315 = tpu.matmul %314, %185, %cst_62 {dimension_numbers = #tpu.dot_dimension_numbers<[1], [0], [0], [1], [0, 0, 1, 1], [], []>} : vector<8x32xbf16>, vector<32x128xbf16>, vector<8x128xf32> -> vector<8x128xf32>
    %316 = arith.addf %313, %315 : vector<8x128xf32>
    %317 = arith.mulf %316, %8 : vector<8x128xf32>
    %318 = math.tanh %317 : vector<8x128xf32>
    %cst_63 = arith.constant 5.000000e-01 : f32
    %319 = vector.broadcast %cst_63 : f32 to vector<8x128xf32>
    %320 = arith.mulf %319, %318 : vector<8x128xf32>
    %cst_64 = arith.constant 5.000000e-01 : f32
    %321 = vector.broadcast %cst_64 : f32 to vector<8x128xf32>
    %322 = arith.addf %320, %321 : vector<8x128xf32>
    %323 = arith.select %5, %318, %322 : vector<8x128xi1>, vector<8x128xf32>
    %324 = vector.extract_strided_slice %323 {offsets = [0, 0], sizes = [8, 32], strides = [1, 1]} : vector<8x128xf32> to vector<8x32xf32>
    %325 = vector.extract_strided_slice %323 {offsets = [0, 32], sizes = [8, 32], strides = [1, 1]} : vector<8x128xf32> to vector<8x32xf32>
    %326 = vector.extract_strided_slice %323 {offsets = [0, 64], sizes = [8, 32], strides = [1, 1]} : vector<8x128xf32> to vector<8x32xf32>
    %327 = vector.extract_strided_slice %323 {offsets = [0, 96], sizes = [8, 32], strides = [1, 1]} : vector<8x128xf32> to vector<8x32xf32>
    %328 = arith.mulf %325, %310 : vector<8x32xf32>
    %329 = arith.mulf %324, %326 : vector<8x32xf32>
    %330 = arith.addf %328, %329 : vector<8x32xf32>
    %331 = math.tanh %330 : vector<8x32xf32>
    %332 = arith.mulf %327, %331 : vector<8x32xf32>
    %333 = vector.extract_strided_slice %190 {offsets = [56, 0], sizes = [8, 128], strides = [1, 1]} : vector<64x128xf32> to vector<8x128xf32>
    %334 = arith.truncf %332 : vector<8x32xf32> to vector<8x32xbf16>
    %cst_65 = arith.constant dense<0.000000e+00> : vector<8x128xf32>
    %335 = tpu.matmul %334, %185, %cst_65 {dimension_numbers = #tpu.dot_dimension_numbers<[1], [0], [0], [1], [0, 0, 1, 1], [], []>} : vector<8x32xbf16>, vector<32x128xbf16>, vector<8x128xf32> -> vector<8x128xf32>
    %336 = arith.addf %333, %335 : vector<8x128xf32>
    %337 = arith.mulf %336, %8 : vector<8x128xf32>
    %338 = math.tanh %337 : vector<8x128xf32>
    %cst_66 = arith.constant 5.000000e-01 : f32
    %339 = vector.broadcast %cst_66 : f32 to vector<8x128xf32>
    %340 = arith.mulf %339, %338 : vector<8x128xf32>
    %cst_67 = arith.constant 5.000000e-01 : f32
    %341 = vector.broadcast %cst_67 : f32 to vector<8x128xf32>
    %342 = arith.addf %340, %341 : vector<8x128xf32>
    %343 = arith.select %5, %338, %342 : vector<8x128xi1>, vector<8x128xf32>
    %344 = vector.extract_strided_slice %343 {offsets = [0, 0], sizes = [8, 32], strides = [1, 1]} : vector<8x128xf32> to vector<8x32xf32>
    %345 = vector.extract_strided_slice %343 {offsets = [0, 32], sizes = [8, 32], strides = [1, 1]} : vector<8x128xf32> to vector<8x32xf32>
    %346 = vector.extract_strided_slice %343 {offsets = [0, 64], sizes = [8, 32], strides = [1, 1]} : vector<8x128xf32> to vector<8x32xf32>
    %347 = vector.extract_strided_slice %343 {offsets = [0, 96], sizes = [8, 32], strides = [1, 1]} : vector<8x128xf32> to vector<8x32xf32>
    %348 = arith.mulf %345, %330 : vector<8x32xf32>
    %349 = arith.mulf %344, %346 : vector<8x32xf32>
    %350 = arith.addf %348, %349 : vector<8x32xf32>
    %351 = math.tanh %350 : vector<8x32xf32>
    %352 = arith.mulf %347, %351 : vector<8x32xf32>
    %c0_68 = arith.constant 0 : index
    %c0_69 = arith.constant 0 : index
    %353 = vector.load %arg7[%c0_68, %c0_69] : memref<32x32xf32, #tpu.memory_space<vmem>>, vector<32x32xf32>
    %cst_70 = arith.constant dense<0.000000e+00> : vector<8x32xf32>
    %354 = tpu.matmul %352, %353, %cst_70 {dimension_numbers = #tpu.dot_dimension_numbers<[1], [0], [0], [1], [0, 0, 1, 1], [], []>} : vector<8x32xf32>, vector<32x32xf32>, vector<8x32xf32> -> vector<8x32xf32>
    %c0_71 = arith.constant 0 : index
    %c0_72 = arith.constant 0 : index
    %355 = vector.load %arg8[%c0_71, %c0_72] : memref<1x32xf32, #tpu.memory_space<vmem>>, vector<1x32xf32>
    %356 = vector.broadcast %355 : vector<1x32xf32> to vector<8x32xf32>
    %357 = arith.addf %354, %356 : vector<8x32xf32>
    %cst_73 = arith.constant 0.000000e+00 : f32
    %358 = vector.broadcast %cst_73 : f32 to vector<8x32xf32>
    %359 = arith.maximumf %357, %358 : vector<8x32xf32>
    %c0_74 = arith.constant 0 : index
    %c0_75 = arith.constant 0 : index
    %360 = vector.load %arg9[%c0_74, %c0_75] : memref<32x32xf32, #tpu.memory_space<vmem>>, vector<32x32xf32>
    %cst_76 = arith.constant dense<0.000000e+00> : vector<8x32xf32>
    %361 = tpu.matmul %359, %360, %cst_76 {dimension_numbers = #tpu.dot_dimension_numbers<[1], [0], [0], [1], [0, 0, 1, 1], [], []>} : vector<8x32xf32>, vector<32x32xf32>, vector<8x32xf32> -> vector<8x32xf32>
    %c0_77 = arith.constant 0 : index
    %c0_78 = arith.constant 0 : index
    %362 = vector.load %arg10[%c0_77, %c0_78] : memref<1x32xf32, #tpu.memory_space<vmem>>, vector<1x32xf32>
    %363 = vector.broadcast %362 : vector<1x32xf32> to vector<8x32xf32>
    %364 = arith.addf %361, %363 : vector<8x32xf32>
    %cst_79 = arith.constant 0.000000e+00 : f32
    %365 = vector.broadcast %cst_79 : f32 to vector<8x32xf32>
    %366 = arith.maximumf %364, %365 : vector<8x32xf32>
    %c0_80 = arith.constant 0 : index
    %c0_81 = arith.constant 0 : index
    %367 = vector.load %arg11[%c0_80, %c0_81] : memref<32x32xf32, #tpu.memory_space<vmem>>, vector<32x32xf32>
    %cst_82 = arith.constant dense<0.000000e+00> : vector<8x32xf32>
    %368 = tpu.matmul %366, %367, %cst_82 {dimension_numbers = #tpu.dot_dimension_numbers<[1], [0], [0], [1], [0, 0, 1, 1], [], []>} : vector<8x32xf32>, vector<32x32xf32>, vector<8x32xf32> -> vector<8x32xf32>
    %c0_83 = arith.constant 0 : index
    %c0_84 = arith.constant 0 : index
    %369 = vector.load %arg12[%c0_83, %c0_84] : memref<1x32xf32, #tpu.memory_space<vmem>>, vector<1x32xf32>
    %370 = vector.broadcast %369 : vector<1x32xf32> to vector<8x32xf32>
    %371 = arith.addf %368, %370 : vector<8x32xf32>
    %cst_85 = arith.constant 0.000000e+00 : f32
    %372 = vector.broadcast %cst_85 : f32 to vector<8x32xf32>
    %373 = arith.maximumf %371, %372 : vector<8x32xf32>
    %c0_86 = arith.constant 0 : index
    %c0_87 = arith.constant 0 : index
    %374 = vector.load %arg13[%c0_86, %c0_87] : memref<32x4xf32, #tpu.memory_space<vmem>>, vector<32x4xf32>
    %cst_88 = arith.constant dense<0.000000e+00> : vector<8x4xf32>
    %375 = tpu.matmul %373, %374, %cst_88 {dimension_numbers = #tpu.dot_dimension_numbers<[1], [0], [0], [1], [0, 0, 1, 1], [], []>} : vector<8x32xf32>, vector<32x4xf32>, vector<8x4xf32> -> vector<8x4xf32>
    %c0_89 = arith.constant 0 : index
    %c0_90 = arith.constant 0 : index
    %376 = vector.load %arg14[%c0_89, %c0_90] : memref<1x4xf32, #tpu.memory_space<vmem>>, vector<1x4xf32>
    %377 = vector.broadcast %376 : vector<1x4xf32> to vector<8x4xf32>
    %378 = arith.addf %375, %377 : vector<8x4xf32>
    %c0_91 = arith.constant 0 : index
    %c0_92 = arith.constant 0 : index
    %379 = vector.load %arg15[%c0_91, %c0_92] : memref<8x4xf32, #tpu.memory_space<vmem>>, vector<8x4xf32>
    tpu.vector_store %arg15[%c0_91, %c0_92], %378 {strides = array<i32>} : memref<8x4xf32, #tpu.memory_space<vmem>>, vector<8x4xf32>,
    return
  }
}

</mosaic_0001>

<bundles_post_ra>
// kernel: _lstm_model_forward.2
= control target key start
LH: loop header
LB: loop body
LE: loop exit
PB: predicated region body
PF: predicated region fallthrough
CT: control target
= control target key end

     0   :  { %20 = vsyncpa [#allocation3], 0  ;;  %s2856_s0 = inlined_call_operand.hbm [shape: f32[16,128], index: 0, kind: input, shape index: {}]   ;;  %s2857_s1 = inlined_call_operand.vmem [shape: f32[32,128], index: 1, kind: input, shape index: {}]   ;;  %s2858_s2 = inlined_call_operand.vmem [shape: f32[1,128], index: 2, kind: input, shape index: {}]   ;;  %s2859_s3 = inlined_call_operand.vmem [shape: f32[32,128], index: 3, kind: input, shape index: {}]   ;;  %s2860_s4 = inlined_call_operand.vmem [shape: f32[32,128], index: 4, kind: input, shape index: {}]   ;;  %s2861_s5 = inlined_call_operand.vmem [shape: f32[1,128], index: 5, kind: input, shape index: {}]   ;;  %s2862_s6 = inlined_call_operand.vmem [shape: f32[32,32], index: 6, kind: input, shape index: {}]   ;;  %s2863_s7 = inlined_call_operand.hbm [shape: f32[1,32], index: 7, kind: input, shape index: {}]   ;;  %s2864_s8 = inlined_call_operand.vmem [shape: f32[32,32], index: 8, kind: input, shape index: {}]   ;;  %s2865_s9 = inlined_call_operand.vmem [shape: f32[1,32], index: 9, kind: input, shape index: {}]   ;;  %s2866_s10 = inlined_call_operand.vmem [shape: f32[32,32], index: 10, kind: input, shape index: {}]   ;;  %s2867_s11 = inlined_call_operand.vmem [shape: f32[1,32], index: 11, kind: input, shape index: {}]   ;;  %s2868_s12 = inlined_call_operand.vmem [shape: f32[32,4], index: 12, kind: input, shape index: {}]   ;;  %s2869_s13 = inlined_call_operand.vmem [shape: f32[1,4], index: 13, kind: input, shape index: {}]   ;;  %s2870_s14 = inlined_call_operand.vmem [shape: f32[8,8,16], index: 14, kind: input, shape index: {}]   ;;  %s2871_s15 = inlined_call_operand.vmem [shape: f32[8,4], index: 15, kind: output, shape index: {}]  }
   0x1   :  { %21 = vsyncpa [#allocation5], 0  ;;  %s2257_s18 = smov [#allocation2]   ;;  %s2209_s22 = scalar_lea.hbm %s2856_s0, 256 }
   0x2   :  { %s29_s19 = sshll.u32 %s2257_s18, 4  ;;  %p2210_p0 = scmp.ne.s32.totalorder %s2856_s0, %s2209_s22  ;;  %s30_s19 = int_to_ptr.vmem [resolvable:$true] %s29_s19 }
   0x3   :  { %p2213_p1 = scmp.lt.u32.totalorder %s2209_s22, %s2856_s0 }
   0x5   :  { %p2215_p2 = pnand %p2213_p1, %p2210_p0 }
   0x7   :  { %2218 = shalt.err (!%p2215_p2)
}
   0x8   :  { %s2219_s27 = scalar_lea.vmem %s30_s19, 256  ;;  %p2224_p4 = scmp.lt.s32.totalorder %s30_s19, %s30_s19 }
   0x9   :  { %p2220_p3 = scmp.ne.s32.totalorder %s30_s19, %s2219_s27  ;;  %p2225_p5 = scmp.lt.s32.totalorder %s2219_s27, %s2219_s27 }
   0xb   :  { %p2226_p6 = por %p2225_p5, %p2224_p4 }
   0xd   :  { %p2227_p7 = pnand %p2226_p6, %p2220_p3 }
   0xf   :  { %2230 = shalt.err (!%p2227_p7)
}
  0x10   :  { %s2258_s28 = smov 128   ;;  %s2259_s29 = smov 8  }
  0x11   :  { %35 = dma.hbm_to_vmem [thread:$0]  %s2856_s0, 256, %s30_s19, [#allocation3], %s2258_s28, %s2258_s28, %s2259_s29  }
  0x12   :  { %s2260_s17 = smov [#allocation4]   ;;  %s2231_s22 = scalar_lea.hbm %s2863_s7, 16 }
  0x13   :  { %s54_s18 = sshll.u32 %s2260_s17, 4  ;;  %p2232_p8 = scmp.ne.s32.totalorder %s2863_s7, %s2231_s22  ;;  %s55_s18 = int_to_ptr.vmem [resolvable:$true] %s54_s18 }
  0x14   :  { %p2235_p9 = scmp.lt.u32.totalorder %s2231_s22, %s2863_s7 }
  0x16   :  { %p2237_p10 = pnand %p2235_p9, %p2232_p8 }
  0x18   :  { %2240 = shalt.err (!%p2237_p10)
}
  0x19   :  { %s2241_s27 = scalar_lea.vmem %s55_s18, 16  ;;  %s2245_s0 = scalar_lea.vmem %s55_s18, 32 }
  0x1a   :  { %p2242_p11 = scmp.ne.s32.totalorder %s55_s18, %s2241_s27  ;;  %p2246_p12 = scmp.lt.s32.totalorder %s55_s18, %s55_s18 }
  0x1b   :  { %p2247_p13 = scmp.lt.s32.totalorder %s2245_s0, %s2241_s27 }
  0x1d   :  { %p2248_p0 = por %p2247_p13, %p2246_p12 }
  0x1f   :  { %p2249_p1 = pnand %p2248_p0, %p2242_p11 }
  0x21   :  { %2252 = shalt.err (!%p2249_p1)
}
  0x22   :  { %57 = dma.hbm_to_vmem [thread:$0]  %s2863_s7, 16, %s55_s18, [#allocation5]  }
  0x23   :  { %2253 = dma.done.wait [#allocation3], 256  }
  0x24   :  { %2254 = vsyncadd [#allocation3], 4294967040 }
  0x25   :  { %2255 = dma.done.wait [#allocation5], 16  }
  0x26   :  { %2256 = vsyncadd [#allocation5], 4294967280  ;;  %v2261_v0 = vmov 0.0   ;;  %vm2262_vm0 = vmmov 0   ;;  %v129_v1 = vld [vmem:[#allocation2] sm:$0xff]  ;;  %v130_v2 = vld [vmem:[#allocation2 + $0x8] sm:$0xff]  ;;  %v115_v17 = vlaneseq }
  0x27   :  { %1926 = vmatprep.subr.bf16.mxu1 %v2261_v0  ;;  %1930 = vmatprep.mubr.msk.bf16.mxu1 %vm2262_vm0, %v2261_v0  ;;  %v132_v3 = vld [vmem:[%s2857_s1] sm:$0xff]  ;;  %v131_v4 = vpack.c.bf16 %v130_v2, %v129_v1  ;;  %v133_v5 = vld [vmem:[%s2857_s1 + $0x8] sm:$0xff]  ;;  %vm149_vm1 = vcmask 130048   ;;  %v1799_v10 = vld [vmem:[%s2870_s14 + $0x10] sm:$0xff]  ;;  %v2263_v16 = vmov 0   ;;  %v2264_v26 = vmov 0.5  }
  0x28   :  { %v76_v6 = vld [vmem:[%s2870_s14] sm:$0xff]  ;;  %v1798_v7 = vld [vmem:[%s2870_s14 + $0x8] sm:$0xff]  ;;  %v2387_v8 = vpack.c.bf16 %v133_v5, %v132_v3  ;;  %v1800_v11 = vld [vmem:[%s2870_s14 + $0x18] sm:$0xff]  ;;  %v116_v18 = vand.u32 127, %v115_v17  ;;  %s2266_s29 = smov 32   ;;  %vm227_vm5 = vcmask 261120  }
  0x29   :  { %v139_v9 = vpack.c.bf16 %v1798_v7, %v76_v6  ;;  %v134_v12 = vld [vmem:[%s2857_s1 + $0x10] sm:$0xff]  ;;  %1916 = vmatprep.subr.bf16.mxu0 %v131_v4  ;;  %v140_v13 = vpack.c.bf16 %v1800_v11, %v1799_v10  ;;  %v135_v14 = vld [vmem:[%s2857_s1 + $0x18] sm:$0xff]  ;;  %v2424_v19 = vld [vmem:[%s2858_s2] ss:$0 sm:$0xff]  ;;  %s2265_s2 = smov 64   ;;  %vm1790_vm6 = vcmask 31744  }
  0x2a   :  { %1927 = vmatpush3.bf16.msra.mxu1 %v2387_v8  ;;  %1917 = vmatpush3.bf16.msra.mxu0 %v131_v4  ;;  %v2402_v15 = vpack.c.bf16 %v135_v14, %v134_v12  ;;  %vm117_vm2 = vcmp.ge.s32.totalorder %v116_v18, 64  ;;  %vm118_vm3 = vcmp.lt.s32.totalorder %v116_v18, 96  ;;  %v1801_v1 = vld [vmem:[%s2870_s14 + $0x20] sm:$0xff]  ;;  %v1802_v2 = vld [vmem:[%s2870_s14 + $0x28] sm:$0xff]  ;;  %v1803_v3 = vld [vmem:[%s2870_s14 + $0x30] sm:$0xff] }
  0x2b   :  { %1918 = vmatprep.mubr.msk.bf16.mxu0 %vm149_vm1, %v139_v9  ;;  %1928 = vmatprep.subr.bf16.mxu1 %v2261_v0  ;;  %vm2428_vm4 = vmand %vm117_vm2, %vm118_vm3  ;;  %v141_v4 = vpack.c.bf16 %v1802_v2, %v1801_v1  ;;  %v1804_v5 = vld [vmem:[%s2870_s14 + $0x38] sm:$0xff]  ;;  %v1451_v22 = vld [vmem:[%s2862_s6 + $0x10] sm:$0xff] }
  0x2c   :  { %1942 = vmatprep.subr.bf16.mxu0 %v2261_v0  ;;  %v2437_v27 = vsel %vm2428_vm4, 1.0, %v2264_v26  ;;  %v142_v6 = vpack.c.bf16 %v1804_v5, %v1803_v3 }
  0x2d   :  { %1919 = vmatmul.mubr.msk.bf16.vlgmr.msra.gmra.mrb[0].mxu0 %vm149_vm1, %v140_v13 }
  0x2e   :  { %1929 = vmatpush3.bf16.msra.mxu1 %v2402_v15  ;;  %1943 = vmatpush3.bf16.msra.mxu0 %v2387_v8 }
  0x2f   :  { %1934 = vmatprep.subr.bf16.mxu1 %v2261_v0  ;;  %1944 = vmatprep.subr.bf16.mxu0 %v2261_v0 }
  0x30   :  { %1922 = vmatprep.mubr.msk.bf16.mxu0 %vm149_vm1, %v141_v4 }
  0x31   :  { %1931 = vmatmul.mubr.bf16.vlgmr.msra.gmra.mrb[0].mxu1 %v2263_v16 }
  0x32   :  { %1935 = vmatpush3.bf16.msra.mxu1 %v2387_v8  ;;  %1938 = vmatprep.mubr.msk.bf16.mxu1 %vm2262_vm0, %v2261_v0 }
  0x33   :  { %1936 = vmatprep.subr.bf16.mxu1 %v2261_v0  ;;  %1945 = vmatpush3.bf16.msra.mxu0 %v2402_v15 }
  0x34   :  { %1958 = vmatprep.subr.bf16.mxu0 %v2261_v0 }
  0x35   :  { %1923 = vmatmul.mubr.msk.bf16.gmra.mrb[4].mxu0 %vm149_vm1, %v142_v6 }
  0x36   :  { %1937 = vmatpush3.bf16.msra.mxu1 %v2402_v15  ;;  %1946 = vmatprep.mubr.msk.bf16.mxu0 %vm2262_vm0, %v2261_v0 }
  0x37   :  { %1950 = vmatprep.subr.bf16.mxu1 %v2261_v0 }
 0x100   :  { %v2426_v20 = vpop.f32.mrb[0].mxu0 }
 0x101   :  { %v196_v21 = vpop.f32.mrb[1].mxu0 }
 0x102   :  { %v197_v23 = vadd.f32 %v2424_v19, %v196_v21  ;;  %v2433_v24 = vpop.f32.mrb[2].mxu0  ;;  %v205_v21 = vadd.f32 %v2426_v20, %v2424_v19 }
 0x103   :  { %v199_v25 = vpop.f32.mrb[3].mxu0 }
 0x104   :  { %v265_v28 = vpop.f32.mrb[0].mxu1  ;;  %v200_v48 = vadd.f32 %v2424_v19, %v199_v25 }
 0x105   :  { %v271_v29 = vadd.f32 %v265_v28, %v197_v23  ;;  %v1932_v30 = vpop.f32.mrb[1].mxu1 }
 0x106   :  { %v268_v31 = vpop.f32.mrb[2].mxu1 }
 0x107   :  { %v272_v32 = vmul.f32 %v271_v29, %v2437_v27  ;;  %v1933_v33 = vpop.f32.mrb[3].mxu1 }
 0x108   :  { %v2485_v12 = vpop.f32.mrb[4].mxu0 }
 0x109   :  { %2145 = vtanh.f32 %v272_v32  ;;  %v2487_v13 = vpop.f32.mrb[5].mxu0 }
 0x10a   :  { %v2489_v14 = vpop.f32.mrb[6].mxu0  ;;  %v213_v2 = vadd.f32 %v2424_v19, %v2487_v13 }
 0x10b   :  { %v2491_v17 = vpop.f32.mrb[7].mxu0 }
 0x113   :  { %v2146_v34 = vpop.eup %2145 }
 0x114   :  { %v274_v35 = vmul.f32 0.5, %v2146_v34 }
 0x116   :  { %v275_v36 = vadd.f32 0.5, %v274_v35 }
 0x118   :  { %v276_v37 = vsel %vm2428_vm4, %v2146_v34, %v275_v36 }
 0x119   :  { %279 = vrot.lane.b32.xlu0 %v276_v37, %s2265_s2  ;;  %v277_v40 = vmul.f32 0.0, %v276_v37 }
 0x18b   :  { %v280_v38 = vpop.permute.xlu0 %279 }
 0x18c   :  { %v282_v39 = vmul.f32 %v280_v38, %v276_v37 }
 0x18e   :  { %284 = vrot.lane.b32.xlu0 %v282_v39, %s2266_s29 }
 0x200   :  { %v285_v41 = vpop.permute.xlu0 %284 }
 0x201   :  { %v287_v42 = vadd.f32 %v285_v41, %v277_v40 }
 0x203   :  { %2147 = vtanh.f32 %v287_v42 }
 0x20d   :  { %v2148_v43 = vpop.eup %2147 }
 0x20e   :  { %290 = vrot.lane.b32.xlu1 %v2148_v43, %s2265_s2 }
 0x280   :  { %v291_v44 = vpop.permute.xlu1 %290 }
 0x281   :  { %v2445_v45 = vmul.f32 %v291_v44, %v276_v37  ;;  %v208_v44 = vadd.f32 %v2433_v24, %v2424_v19 }
 0x283   :  { %v294_v46 = vpack.c.bf16 %v2445_v45, %v2445_v45 }
 0x285   :  { %296 = vrot.lane.b32.xlu1 %v294_v46, %s2266_s29 }
 0x2f7   :  { %v297_v47 = vpop.permute.xlu1 %296 }
 0x2f8   :  { %1939 = vmatmul.mubr.msk.bf16.vlgmr.msra.gmra.mrb[4].mxu1 %vm227_vm5, %v297_v47 }
 0x2f9   :  { %1951 = vmatpush3.bf16.msra.mxu1 %v2387_v8  ;;  %1954 = vmatprep.mubr.msk.bf16.mxu1 %vm2262_vm0, %v2261_v0 }
 0x2fa   :  { %1952 = vmatprep.subr.bf16.mxu1 %v2261_v0 }
 0x2fd   :  { %1953 = vmatpush3.bf16.msra.mxu1 %v2402_v15 }
 0x2fe   :  { %1966 = vmatprep.subr.bf16.mxu1 %v2261_v0 }
 0x3cb   :  { %v335_v49 = vpop.f32.mrb[4].mxu1 }
 0x3cc   :  { %v341_v50 = vadd.f32 %v335_v49, %v200_v48  ;;  %v1940_v51 = vpop.f32.mrb[5].mxu1 }
 0x3cd   :  { %v338_v52 = vpop.f32.mrb[6].mxu1 }
 0x3ce   :  { %v342_v53 = vmul.f32 %v341_v50, %v2437_v27  ;;  %v1941_v54 = vpop.f32.mrb[7].mxu1 }
 0x3d0   :  { %2149 = vtanh.f32 %v342_v53 }
 0x3da   :  { %v2150_v55 = vpop.eup %2149 }
 0x3db   :  { %v344_v56 = vmul.f32 0.5, %v2150_v55 }
 0x3dd   :  { %v345_v57 = vadd.f32 0.5, %v344_v56 }
 0x3df   :  { %v346_v58 = vsel %vm2428_vm4, %v2150_v55, %v345_v57 }
 0x3e0   :  { %349 = vrot.lane.b32.xlu0 %v346_v58, %s2265_s2  ;;  %v347_v61 = vmul.f32 %v346_v58, %v287_v42 }
 0x452   :  { %v350_v59 = vpop.permute.xlu0 %349 }
 0x453   :  { %v352_v60 = vmul.f32 %v350_v59, %v346_v58 }
 0x455   :  { %354 = vrot.lane.b32.xlu1 %v352_v60, %s2266_s29 }
 0x4c7   :  { %v355_v62 = vpop.permute.xlu1 %354 }
 0x4c8   :  { %v357_v63 = vadd.f32 %v355_v62, %v347_v61 }
 0x4ca   :  { %2151 = vtanh.f32 %v357_v63 }
 0x4d4   :  { %v2152_v7 = vpop.eup %2151 }
 0x4d5   :  { %360 = vrot.lane.b32.xlu0 %v2152_v7, %s2265_s2 }
 0x547   :  { %v361_v9 = vpop.permute.xlu0 %360 }
 0x548   :  { %v2480_v10 = vmul.f32 %v361_v9, %v346_v58 }
 0x54a   :  { %v364_v11 = vpack.c.bf16 %v2480_v10, %v2480_v10 }
 0x54c   :  { %366 = vrot.lane.b32.xlu1 %v364_v11, %s2266_s29 }
 0x5be   :  { %v367_v18 = vpop.permute.xlu1 %366 }
 0x5bf   :  { %1947 = vmatmul.mubr.msk.bf16.vlgmr.msra.gmra.mrb[8].mxu0 %vm227_vm5, %v367_v18 }
 0x5c0   :  { %1959 = vmatpush3.bf16.msra.mxu0 %v2387_v8  ;;  %1962 = vmatprep.mubr.msk.bf16.mxu0 %vm2262_vm0, %v2261_v0 }
 0x5c1   :  { %1960 = vmatprep.subr.bf16.mxu0 %v2261_v0 }
 0x5c4   :  { %1961 = vmatpush3.bf16.msra.mxu0 %v2402_v15 }
 0x5c5   :  { %1974 = vmatprep.subr.bf16.mxu0 %v2261_v0 }
 0x692   :  { %v405_v23 = vpop.f32.mrb[8].mxu0 }
 0x693   :  { %v411_v25 = vadd.f32 %v405_v23, %v205_v21  ;;  %v1948_v26 = vpop.f32.mrb[9].mxu0 }
 0x694   :  { %v408_v28 = vpop.f32.mrb[10].mxu0 }
 0x695   :  { %v412_v29 = vmul.f32 %v411_v25, %v2437_v27  ;;  %v1949_v30 = vpop.f32.mrb[11].mxu0 }
 0x697   :  { %2153 = vtanh.f32 %v412_v29 }
 0x6a1   :  { %v2154_v31 = vpop.eup %2153 }
 0x6a2   :  { %v414_v32 = vmul.f32 0.5, %v2154_v31 }
 0x6a4   :  { %v415_v33 = vadd.f32 0.5, %v414_v32 }
 0x6a6   :  { %v416_v34 = vsel %vm2428_vm4, %v2154_v31, %v415_v33 }
 0x6a7   :  { %419 = vrot.lane.b32.xlu0 %v416_v34, %s2265_s2  ;;  %v417_v20 = vmul.f32 %v416_v34, %v357_v63 }
 0x719   :  { %v420_v35 = vpop.permute.xlu0 %419 }
 0x71a   :  { %v422_v36 = vmul.f32 %v420_v35, %v416_v34  ;;  %v216_v35 = vadd.f32 %v2424_v19, %v2491_v17 }
 0x71c   :  { %424 = vrot.lane.b32.xlu1 %v422_v36, %s2266_s29 }
 0x78e   :  { %v425_v37 = vpop.permute.xlu1 %424 }
 0x78f   :  { %v427_v38 = vadd.f32 %v425_v37, %v417_v20 }
 0x791   :  { %2155 = vtanh.f32 %v427_v38 }
 0x79b   :  { %v2156_v39 = vpop.eup %2155 }
 0x79c   :  { %430 = vrot.lane.b32.xlu0 %v2156_v39, %s2265_s2 }
 0x80e   :  { %v431_v40 = vpop.permute.xlu0 %430 }
 0x80f   :  { %v2508_v41 = vmul.f32 %v431_v40, %v416_v34 }
 0x811   :  { %v434_v42 = vpack.c.bf16 %v2508_v41, %v2508_v41 }
 0x813   :  { %436 = vrot.lane.b32.xlu1 %v434_v42, %s2266_s29 }
 0x885   :  { %v437_v43 = vpop.permute.xlu1 %436 }
 0x886   :  { %1955 = vmatmul.mubr.msk.bf16.vlgmr.msra.gmra.mrb[8].mxu1 %vm227_vm5, %v437_v43 }
 0x887   :  { %1967 = vmatpush3.bf16.msra.mxu1 %v2387_v8  ;;  %1970 = vmatprep.mubr.msk.bf16.mxu1 %vm2262_vm0, %v2261_v0 }
 0x888   :  { %1968 = vmatprep.subr.bf16.mxu1 %v2261_v0 }
 0x88b   :  { %1969 = vmatpush3.bf16.msra.mxu1 %v2402_v15 }
 0x88c   :  { %1982 = vmatprep.subr.bf16.mxu1 %v2261_v0 }
 0x959   :  { %v475_v46 = vpop.f32.mrb[8].mxu1 }
 0x95a   :  { %v481_v47 = vadd.f32 %v475_v46, %v208_v44  ;;  %v1956_v48 = vpop.f32.mrb[9].mxu1 }
 0x95b   :  { %v478_v49 = vpop.f32.mrb[10].mxu1 }
 0x95c   :  { %v482_v50 = vmul.f32 %v481_v47, %v2437_v27  ;;  %v1957_v51 = vpop.f32.mrb[11].mxu1 }
 0x95e   :  { %2157 = vtanh.f32 %v482_v50 }
 0x968   :  { %v2158_v52 = vpop.eup %2157 }
 0x969   :  { %v484_v53 = vmul.f32 0.5, %v2158_v52 }
 0x96b   :  { %v485_v54 = vadd.f32 0.5, %v484_v53 }
 0x96d   :  { %v486_v55 = vsel %vm2428_vm4, %v2158_v52, %v485_v54  ;;  %v221_v54 = vadd.f32 %v2485_v12, %v2424_v19 }
 0x96e   :  { %489 = vrot.lane.b32.xlu0 %v486_v55, %s2265_s2  ;;  %v487_v24 = vmul.f32 %v486_v55, %v427_v38 }
 0x9e0   :  { %v490_v56 = vpop.permute.xlu0 %489 }
 0x9e1   :  { %v492_v57 = vmul.f32 %v490_v56, %v486_v55 }
 0x9e3   :  { %494 = vrot.lane.b32.xlu1 %v492_v57, %s2266_s29 }
 0xa55   :  { %v495_v58 = vpop.permute.xlu1 %494 }
 0xa56   :  { %v497_v59 = vadd.f32 %v495_v58, %v487_v24 }
 0xa58   :  { %2159 = vtanh.f32 %v497_v59 }
 0xa62   :  { %v2160_v60 = vpop.eup %2159 }
 0xa63   :  { %500 = vrot.lane.b32.xlu0 %v2160_v60, %s2265_s2 }
 0xad5   :  { %v501_v61 = vpop.permute.xlu0 %500 }
 0xad6   :  { %v2528_v62 = vmul.f32 %v501_v61, %v486_v55 }
 0xad8   :  { %v504_v63 = vpack.c.bf16 %v2528_v62, %v2528_v62 }
 0xada   :  { %506 = vrot.lane.b32.xlu1 %v504_v63, %s2266_s29 }
 0xb4c   :  { %v507_v1 = vpop.permute.xlu1 %506 }
 0xb4d   :  { %1963 = vmatmul.mubr.msk.bf16.vlgmr.msra.gmra.mrb[12].mxu0 %vm227_vm5, %v507_v1 }
 0xb4e   :  { %1975 = vmatpush3.bf16.msra.mxu0 %v2387_v8  ;;  %1978 = vmatprep.mubr.msk.bf16.mxu0 %vm2262_vm0, %v2261_v0 }
 0xb4f   :  { %1976 = vmatprep.subr.bf16.mxu0 %v2261_v0 }
 0xb52   :  { %1977 = vmatpush3.bf16.msra.mxu0 %v2402_v15 }
 0xc20   :  { %v545_v3 = vpop.f32.mrb[12].mxu0 }
 0xc21   :  { %v551_v4 = vadd.f32 %v545_v3, %v213_v2  ;;  %v1964_v5 = vpop.f32.mrb[13].mxu0 }
 0xc22   :  { %v548_v6 = vpop.f32.mrb[14].mxu0 }
 0xc23   :  { %v552_v7 = vmul.f32 %v551_v4, %v2437_v27  ;;  %v1965_v9 = vpop.f32.mrb[15].mxu0  ;;  %v784_v6 = vld [vmem:[%s2859_s3] sm:$0xff] }
 0xc25   :  { %2161 = vtanh.f32 %v552_v7  ;;  %v785_v7 = vld [vmem:[%s2859_s3 + $0x8] sm:$0xff] }
 0xc26   :  { %v788_v9 = vpack.c.bf16 %v785_v7, %v784_v6 }
 0xc28   :  { %1990 = vmatprep.subr.bf16.mxu0 %v788_v9 }
 0xc2f   :  { %v2162_v11 = vpop.eup %2161 }
 0xc30   :  { %v554_v18 = vmul.f32 0.5, %v2162_v11 }
 0xc32   :  { %v555_v21 = vadd.f32 0.5, %v554_v18  ;;  %v797_v18 = vpack.c.bf16 %v2480_v10, %v2445_v45 }
 0xc34   :  { %v556_v23 = vsel %vm2428_vm4, %v2162_v11, %v555_v21  ;;  %v786_v21 = vld [vmem:[%s2859_s3 + $0x10] sm:$0xff] }
 0xc35   :  { %559 = vrot.lane.b32.xlu0 %v556_v23, %s2265_s2  ;;  %v557_v13 = vmul.f32 %v556_v23, %v497_v59 }
 0xca7   :  { %v560_v25 = vpop.permute.xlu0 %559 }
 0xca8   :  { %v562_v26 = vmul.f32 %v560_v25, %v556_v23 }
 0xcaa   :  { %564 = vrot.lane.b32.xlu1 %v562_v26, %s2266_s29 }
 0xd1c   :  { %v565_v28 = vpop.permute.xlu1 %564 }
 0xd1d   :  { %v567_v29 = vadd.f32 %v565_v28, %v557_v13  ;;  %v798_v28 = vpack.c.bf16 %v2528_v62, %v2508_v41  ;;  %v793_v41 = vld [vmem:[%s2860_s4 + $0x18] sm:$0xff] }
 0xd1f   :  { %2163 = vtanh.f32 %v567_v29 }
 0xd29   :  { %v2164_v30 = vpop.eup %2163 }
 0xd2a   :  { %570 = vrot.lane.b32.xlu0 %v2164_v30, %s2265_s2  ;;  %v791_v30 = vld [vmem:[%s2860_s4 + $0x8] sm:$0xff] }
 0xd9c   :  { %v571_v31 = vpop.permute.xlu0 %570 }
 0xd9d   :  { %v2547_v32 = vmul.f32 %v571_v31, %v556_v23  ;;  %v787_v23 = vld [vmem:[%s2859_s3 + $0x18] sm:$0xff] }
 0xd9e   :  { %v789_v25 = vpack.c.bf16 %v787_v23, %v786_v21 }
 0xd9f   :  { %v574_v33 = vpack.c.bf16 %v2547_v32, %v2547_v32 }
 0xda1   :  { %576 = vrot.lane.b32.xlu1 %v574_v33, %s2266_s29  ;;  %v792_v33 = vld [vmem:[%s2860_s4 + $0x10] sm:$0xff] }
 0xe13   :  { %v577_v34 = vpop.permute.xlu1 %576 }
 0xe14   :  { %1971 = vmatmul.mubr.msk.bf16.vlgmr.msra.gmra.mrb[12].mxu1 %vm227_vm5, %v577_v34  ;;  %v2625_v34 = vpack.c.bf16 %v793_v41, %v792_v33 }
 0xe15   :  { %1983 = vmatpush3.bf16.msra.mxu1 %v2387_v8  ;;  %1986 = vmatprep.mubr.msk.bf16.mxu1 %vm2262_vm0, %v2261_v0 }
 0xe16   :  { %1984 = vmatprep.subr.bf16.mxu1 %v2261_v0 }
 0xe19   :  { %1985 = vmatpush3.bf16.msra.mxu1 %v2402_v15 }
 0xe1a   :  { %2002 = vmatprep.subr.bf16.mxu1 %v2261_v0 }
 0xee7   :  { %v615_v36 = vpop.f32.mrb[12].mxu1 }
 0xee8   :  { %v621_v20 = vadd.f32 %v615_v36, %v216_v35  ;;  %v1972_v37 = vpop.f32.mrb[13].mxu1  ;;  %v224_v36 = vadd.f32 %v2489_v14, %v2424_v19 }
 0xee9   :  { %v618_v38 = vpop.f32.mrb[14].mxu1 }
 0xeea   :  { %v622_v39 = vmul.f32 %v621_v20, %v2437_v27  ;;  %v1973_v40 = vpop.f32.mrb[15].mxu1 }
 0xeeb   :  { %v2649_v40 = vld [vmem:[%s2861_s5] ss:$0 sm:$0xff] }
 0xeec   :  { %2165 = vtanh.f32 %v622_v39 }
 0xef6   :  { %v2166_v8 = vpop.eup %2165 }
 0xef7   :  { %v624_v42 = vmul.f32 0.5, %v2166_v8 }
 0xef9   :  { %v625_v43 = vadd.f32 0.5, %v624_v42 }
 0xefb   :  { %v626_v44 = vsel %vm2428_vm4, %v2166_v8, %v625_v43 }
 0xefc   :  { %629 = vrot.lane.b32.xlu0 %v626_v44, %s2265_s2  ;;  %v627_v17 = vmul.f32 %v626_v44, %v567_v29  ;;  %v790_v29 = vld [vmem:[%s2860_s4] sm:$0xff] }
 0xefd   :  { %v2615_v31 = vpack.c.bf16 %v791_v30, %v790_v29 }
 0xf6e   :  { %v630_v15 = vpop.permute.xlu0 %629 }
 0xf6f   :  { %v632_v46 = vmul.f32 %v630_v15, %v626_v44 }
 0xf71   :  { %634 = vrot.lane.b32.xlu1 %v632_v46, %s2266_s29 }
 0xfe3   :  { %v635_v47 = vpop.permute.xlu1 %634 }
 0xfe4   :  { %v637_v48 = vadd.f32 %v635_v47, %v627_v17 }
 0xfe6   :  { %2167 = vtanh.f32 %v637_v48 }
 0xff0   :  { %v2168_v49 = vpop.eup %2167 }
 0xff1   :  { %640 = vrot.lane.b32.xlu0 %v2168_v49, %s2265_s2 }
0x1063   :  { %v641_v50 = vpop.permute.xlu0 %640 }
0x1064   :  { %v2567_v51 = vmul.f32 %v641_v50, %v626_v44 }
0x1066   :  { %v644_v52 = vpack.c.bf16 %v2567_v51, %v2567_v51 }
0x1068   :  { %646 = vrot.lane.b32.xlu1 %v644_v52, %s2266_s29 }
0x10da   :  { %v647_v53 = vpop.permute.xlu1 %646 }
0x10db   :  { %1979 = vmatmul.mubr.msk.bf16.vlgmr.msra.gmra.mrb[16].mxu0 %vm227_vm5, %v647_v53 }
0x10dc   :  { %1991 = vmatpush3.bf16.msra.mxu0 %v788_v9 }
0x10dd   :  { %1992 = vmatprep.subr.bf16.mxu0 %v789_v25 }
0x10e0   :  { %1993 = vmatpush3.bf16.msra.mxu0 %v789_v25 }
0x10e1   :  { %2018 = vmatprep.subr.bf16.mxu0 %v2261_v0 }
0x11ae   :  { %v685_v55 = vpop.f32.mrb[16].mxu0 }
0x11af   :  { %v691_v56 = vadd.f32 %v685_v55, %v221_v54  ;;  %v1980_v57 = vpop.f32.mrb[17].mxu0 }
0x11b0   :  { %v688_v24 = vpop.f32.mrb[18].mxu0 }
0x11b1   :  { %v692_v58 = vmul.f32 %v691_v56, %v2437_v27  ;;  %v1981_v59 = vpop.f32.mrb[19].mxu0 }
0x11b3   :  { %2169 = vtanh.f32 %v692_v58 }
0x11bd   :  { %v2170_v60 = vpop.eup %2169 }
0x11be   :  { %v694_v61 = vmul.f32 0.5, %v2170_v60 }
0x11c0   :  { %v695_v63 = vadd.f32 0.5, %v694_v61 }
0x11c2   :  { %v696_v1 = vsel %vm2428_vm4, %v2170_v60, %v695_v63 }
0x11c3   :  { %699 = vrot.lane.b32.xlu0 %v696_v1, %s2265_s2  ;;  %v697_v12 = vmul.f32 %v696_v1, %v637_v48 }
0x1235   :  { %v700_v2 = vpop.permute.xlu0 %699 }
0x1236   :  { %v702_v3 = vmul.f32 %v700_v2, %v696_v1 }
0x1238   :  { %704 = vrot.lane.b32.xlu1 %v702_v3, %s2266_s29 }
0x12aa   :  { %v705_v4 = vpop.permute.xlu1 %704 }
0x12ab   :  { %v2580_v5 = vadd.f32 %v705_v4, %v697_v12 }
0x12ad   :  { %2171 = vtanh.f32 %v2580_v5 }
0x12b7   :  { %v2172_v11 = vpop.eup %2171 }
0x12b8   :  { %710 = vrot.lane.b32.xlu0 %v2172_v11, %s2265_s2 }
0x12bc   :  { %811 = vrot.lane.b32.xlu0 %v797_v18, %s2266_s29 }
0x132a   :  { %v711_v26 = vpop.permute.xlu0 %710 }
0x132b   :  { %v2600_v13 = vmul.f32 %v711_v26, %v696_v1 }
0x132d   :  { %v714_v45 = vpack.c.bf16 %v2600_v13, %v2600_v13 }
0x132e   :  { %v812_v10 = vpop.permute.xlu0 %811 }
0x132f   :  { %716 = vrot.lane.b32.xlu1 %v714_v45, %s2266_s29  ;;  %1994 = vmatprep.mubr.msk.bf16.mxu0 %vm227_vm5, %v812_v10 }
0x1333   :  { %813 = vrot.lane.b32.xlu1 %v798_v28, %s2266_s29 }
0x13a1   :  { %v717_v62 = vpop.permute.xlu1 %716 }
0x13a2   :  { %1987 = vmatmul.mubr.msk.bf16.vlgmr.msra.gmra.mrb[16].mxu1 %vm227_vm5, %v717_v62 }
0x13a3   :  { %2003 = vmatpush3.bf16.msra.mxu1 %v2615_v31  ;;  %2006 = vmatprep.mubr.msk.bf16.mxu1 %vm2262_vm0, %v2261_v0 }
0x13a4   :  { %2004 = vmatprep.subr.bf16.mxu1 %v2261_v0 }
0x13a5   :  { %v814_v35 = vpop.permute.xlu1 %813 }
0x13a6   :  { %1995 = vmatmul.mubr.msk.bf16.vlgmr.msra.gmra.mrb[20].mxu0 %vm227_vm5, %v814_v35 }
0x13a7   :  { %2005 = vmatpush3.bf16.msra.mxu1 %v2625_v34  ;;  %2019 = vmatpush3.bf16.msra.mxu0 %v2615_v31 }
0x13a8   :  { %2010 = vmatprep.subr.bf16.mxu1 %v2261_v0  ;;  %2020 = vmatprep.subr.bf16.mxu0 %v2261_v0 }
0x13aa   :  { %2007 = vmatmul.mubr.bf16.vlgmr.msra.gmra.mrb[20].mxu1 %v2263_v16 }
0x13ab   :  { %2011 = vmatpush3.bf16.msra.mxu1 %v2615_v31  ;;  %2014 = vmatprep.mubr.msk.bf16.mxu1 %vm2262_vm0, %v2261_v0 }
0x13ac   :  { %2012 = vmatprep.subr.bf16.mxu1 %v2261_v0  ;;  %2021 = vmatpush3.bf16.msra.mxu0 %v2625_v34 }
0x13ad   :  { %2034 = vmatprep.subr.bf16.mxu0 %v2261_v0 }
0x13af   :  { %2013 = vmatpush3.bf16.msra.mxu1 %v2625_v34 }
0x13b0   :  { %2026 = vmatprep.subr.bf16.mxu1 %v2261_v0 }
0x1475   :  { %v755_v20 = vpop.f32.mrb[16].mxu1 }
0x1476   :  { %v761_v16 = vadd.f32 %v755_v20, %v224_v36  ;;  %v1988_v37 = vpop.f32.mrb[17].mxu1 }
0x1477   :  { %v758_v38 = vpop.f32.mrb[18].mxu1 }
0x1478   :  { %v1989_v39 = vpop.f32.mrb[19].mxu1  ;;  %v762_v56 = vmul.f32 %v761_v16, %v2437_v27 }
0x1479   :  { %v2651_v8 = vpop.f32.mrb[20].mxu0 }
0x147a   :  { %v865_v42 = vpop.f32.mrb[21].mxu0 }
0x147b   :  { %v866_v43 = vadd.f32 %v2649_v40, %v865_v42  ;;  %v2654_v44 = vpop.f32.mrb[22].mxu0 }
0x147c   :  { %v868_v15 = vpop.f32.mrb[23].mxu0 }
0x147d   :  { %v930_v46 = vpop.f32.mrb[20].mxu1  ;;  %v869_v26 = vadd.f32 %v2649_v40, %v868_v15 }
0x147e   :  { %v936_v19 = vadd.f32 %v930_v46, %v866_v43  ;;  %v2008_v14 = vpop.f32.mrb[21].mxu1 }
0x147f   :  { %v933_v17 = vpop.f32.mrb[22].mxu1 }
0x1480   :  { %v937_v47 = vmul.f32 %v936_v19, %v2437_v27  ;;  %v2009_v48 = vpop.f32.mrb[23].mxu1 }
0x1482   :  { %2173 = vtanh.f32 %v937_v47 }
0x1483   :  { %2175 = vtanh.f32 %v762_v56 }
0x148c   :  { %v2174_v49 = vpop.eup %2173 }
0x148d   :  { %v939_v50 = vmul.f32 0.5, %v2174_v49  ;;  %v2176_v59 = vpop.eup %2175 }
0x148e   :  { %v764_v60 = vmul.f32 0.5, %v2176_v59 }
0x148f   :  { %v940_v52 = vadd.f32 0.5, %v939_v50 }
0x1490   :  { %v765_v63 = vadd.f32 0.5, %v764_v60 }
0x1491   :  { %v941_v53 = vsel %vm2428_vm4, %v2174_v49, %v940_v52  ;;  %v874_v49 = vadd.f32 %v2651_v8, %v2649_v40 }
0x1492   :  { %944 = vrot.lane.b32.xlu0 %v941_v53, %s2265_s2  ;;  %v942_v57 = vmul.f32 0.0, %v941_v53  ;;  %v766_v1 = vsel %vm2428_vm4, %v2176_v59, %v765_v63 }
0x1493   :  { %v767_v9 = vmul.f32 %v766_v1, %v2580_v5  ;;  %v799_v5 = vpack.c.bf16 %v2567_v51, %v2547_v32 }
0x1504   :  { %v945_v54 = vpop.permute.xlu0 %944 }
0x1505   :  { %v947_v55 = vmul.f32 %v945_v54, %v941_v53 }
0x1507   :  { %949 = vrot.lane.b32.xlu1 %v947_v55, %s2266_s29 }
0x1579   :  { %v950_v24 = vpop.permute.xlu1 %949 }
0x157a   :  { %v952_v58 = vadd.f32 %v950_v24, %v942_v57 }
0x157c   :  { %2177 = vtanh.f32 %v952_v58 }
0x1586   :  { %v2178_v61 = vpop.eup %2177 }
0x1587   :  { %955 = vrot.lane.b32.xlu0 %v2178_v61, %s2265_s2 }
0x158b   :  { %769 = vrot.lane.b32.xlu0 %v766_v1, %s2265_s2 }
0x15f9   :  { %v956_v2 = vpop.permute.xlu0 %955 }
0x15fa   :  { %v958_v3 = vmul.f32 %v956_v2, %v941_v53 }
0x15fc   :  { %v959_v12 = vpack.c.bf16 %v958_v3, %v958_v3 }
0x15fd   :  { %v770_v4 = vpop.permute.xlu0 %769 }
0x15fe   :  { %v772_v6 = vmul.f32 %v770_v4, %v766_v1  ;;  %961 = vrot.lane.b32.xlu1 %v959_v12, %s2266_s29 }
0x1600   :  { %774 = vrot.lane.b32.xlu0 %v772_v6, %s2266_s29 }
0x1670   :  { %v962_v7 = vpop.permute.xlu1 %961 }
0x1671   :  { %2015 = vmatmul.mubr.msk.bf16.vlgmr.msra.gmra.mrb[24].mxu1 %vm227_vm5, %v962_v7  ;;  %v877_v7 = vadd.f32 %v2654_v44, %v2649_v40 }
0x1672   :  { %v775_v11 = vpop.permute.xlu0 %774  ;;  %2027 = vmatpush3.bf16.msra.mxu1 %v2615_v31  ;;  %2030 = vmatprep.mubr.msk.bf16.mxu1 %vm2262_vm0, %v2261_v0 }
0x1673   :  { %v777_v18 = vadd.f32 %v775_v11, %v767_v9  ;;  %2028 = vmatprep.subr.bf16.mxu1 %v2261_v0 }
0x1675   :  { %2179 = vtanh.f32 %v777_v18 }
0x1676   :  { %2029 = vmatpush3.bf16.msra.mxu1 %v2625_v34 }
0x1677   :  { %2042 = vmatprep.subr.bf16.mxu1 %v2261_v0 }
0x167f   :  { %v2180_v21 = vpop.eup %2179 }
0x1680   :  { %780 = vrot.lane.b32.xlu0 %v2180_v21, %s2265_s2 }
0x1684   :  { %815 = vrot.lane.b32.xlu0 %v799_v5, %s2266_s29 }
0x16f2   :  { %v781_v23 = vpop.permute.xlu0 %780 }
0x16f3   :  { %v783_v38 = vmul.f32 %v781_v23, %v766_v1 }
0x16f5   :  { %v800_v42 = vpack.c.bf16 %v783_v38, %v2600_v13 }
0x16f6   :  { %v816_v25 = vpop.permute.xlu0 %815 }
0x16f7   :  { %1998 = vmatprep.mubr.msk.bf16.mxu0 %vm227_vm5, %v816_v25 }
0x1744   :  { %v1000_v45 = vpop.f32.mrb[24].mxu1 }
0x1745   :  { %v1006_v10 = vadd.f32 %v1000_v45, %v869_v26  ;;  %v2016_v28 = vpop.f32.mrb[25].mxu1 }
0x1746   :  { %v1003_v29 = vpop.f32.mrb[26].mxu1 }
0x1747   :  { %v1007_v30 = vmul.f32 %v1006_v10, %v2437_v27  ;;  %v2017_v33 = vpop.f32.mrb[27].mxu1 }
0x1749   :  { %2181 = vtanh.f32 %v1007_v30 }
0x1753   :  { %v2182_v41 = vpop.eup %2181 }
0x1754   :  { %v1009_v62 = vmul.f32 0.5, %v2182_v41 }
0x1756   :  { %v1010_v35 = vadd.f32 0.5, %v1009_v62 }
0x1758   :  { %v1011_v32 = vsel %vm2428_vm4, %v2182_v41, %v1010_v35 }
0x1759   :  { %1014 = vrot.lane.b32.xlu1 %v1011_v32, %s2265_s2  ;;  %v1012_v20 = vmul.f32 %v1011_v32, %v952_v58 }
0x17cb   :  { %v1015_v51 = vpop.permute.xlu1 %1014 }
0x17cc   :  { %v1017_v36 = vmul.f32 %v1015_v51, %v1011_v32 }
0x17ce   :  { %1019 = vrot.lane.b32.xlu1 %v1017_v36, %s2266_s29 }
0x1840   :  { %v1020_v16 = vpop.permute.xlu1 %1019 }
0x1841   :  { %v1022_v37 = vadd.f32 %v1020_v16, %v1012_v20 }
0x1843   :  { %2183 = vtanh.f32 %v1022_v37 }
0x184d   :  { %v2184_v39 = vpop.eup %2183 }
0x184e   :  { %1025 = vrot.lane.b32.xlu1 %v2184_v39, %s2265_s2 }
0x1852   :  { %817 = vrot.lane.b32.xlu1 %v800_v42, %s2266_s29 }
0x18c0   :  { %v1026_v43 = vpop.permute.xlu1 %1025 }
0x18c1   :  { %v1028_v15 = vmul.f32 %v1026_v43, %v1011_v32 }
0x18c3   :  { %v1029_v46 = vpack.c.bf16 %v1028_v15, %v1028_v15 }
0x18c4   :  { %v818_v19 = vpop.permute.xlu1 %817 }
0x18c5   :  { %1031 = vrot.lane.b32.xlu0 %v1029_v46, %s2266_s29  ;;  %1999 = vmatmul.mubr.msk.bf16.gmra.mrb[24].mxu0 %vm227_vm5, %v818_v19 }
0x18c6   :  { %2022 = vmatprep.mubr.msk.bf16.mxu0 %vm2262_vm0, %v2261_v0 }
0x1937   :  { %v1032_v14 = vpop.permute.xlu0 %1031 }
0x1938   :  { %2023 = vmatmul.mubr.msk.bf16.vlgmr.msra.gmra.mrb[28].mxu0 %vm227_vm5, %v1032_v14 }
0x1939   :  { %2035 = vmatpush3.bf16.msra.mxu0 %v2615_v31  ;;  %2038 = vmatprep.mubr.msk.bf16.mxu0 %vm2262_vm0, %v2261_v0 }
0x193a   :  { %2036 = vmatprep.subr.bf16.mxu0 %v2261_v0 }
0x193d   :  { %2037 = vmatpush3.bf16.msra.mxu0 %v2625_v34 }
0x193e   :  { %2050 = vmatprep.subr.bf16.mxu0 %v2261_v0 }
0x1998   :  { %v2701_v13 = vpop.f32.mrb[24].mxu0 }
0x1999   :  { %v2703_v17 = vpop.f32.mrb[25].mxu0 }
0x199a   :  { %v2705_v47 = vpop.f32.mrb[26].mxu0  ;;  %v882_v36 = vadd.f32 %v2649_v40, %v2703_v17 }
0x199b   :  { %v2707_v48 = vpop.f32.mrb[27].mxu0 }
0x1a0b   :  { %v1070_v50 = vpop.f32.mrb[28].mxu0 }
0x1a0c   :  { %v1076_v52 = vadd.f32 %v1070_v50, %v874_v49  ;;  %v2024_v53 = vpop.f32.mrb[29].mxu0 }
0x1a0d   :  { %v1073_v54 = vpop.f32.mrb[30].mxu0 }
0x1a0e   :  { %v1077_v55 = vmul.f32 %v1076_v52, %v2437_v27  ;;  %v2025_v56 = vpop.f32.mrb[31].mxu0 }
0x1a10   :  { %2185 = vtanh.f32 %v1077_v55 }
0x1a1a   :  { %v2186_v57 = vpop.eup %2185 }
0x1a1b   :  { %v1079_v24 = vmul.f32 0.5, %v2186_v57 }
0x1a1d   :  { %v1080_v58 = vadd.f32 0.5, %v1079_v24  ;;  %v885_v24 = vadd.f32 %v2649_v40, %v2707_v48 }
0x1a1f   :  { %v1081_v59 = vsel %vm2428_vm4, %v2186_v57, %v1080_v58 }
0x1a20   :  { %1084 = vrot.lane.b32.xlu1 %v1081_v59, %s2265_s2  ;;  %v1082_v8 = vmul.f32 %v1081_v59, %v1022_v37 }
0x1a92   :  { %v1085_v60 = vpop.permute.xlu1 %1084 }
0x1a93   :  { %v1087_v61 = vmul.f32 %v1085_v60, %v1081_v59 }
0x1a95   :  { %1089 = vrot.lane.b32.xlu0 %v1087_v61, %s2266_s29 }
0x1b07   :  { %v1090_v63 = vpop.permute.xlu0 %1089 }
0x1b08   :  { %v1092_v1 = vadd.f32 %v1090_v63, %v1082_v8 }
0x1b0a   :  { %2187 = vtanh.f32 %v1092_v1 }
0x1b14   :  { %v2188_v2 = vpop.eup %2187 }
0x1b15   :  { %1095 = vrot.lane.b32.xlu1 %v2188_v2, %s2265_s2 }
0x1b87   :  { %v1096_v3 = vpop.permute.xlu1 %1095 }
0x1b88   :  { %v1098_v12 = vmul.f32 %v1096_v3, %v1081_v59 }
0x1b8a   :  { %v1099_v4 = vpack.c.bf16 %v1098_v12, %v1098_v12 }
0x1b8c   :  { %1101 = vrot.lane.b32.xlu0 %v1099_v4, %s2266_s29 }
0x1bfe   :  { %v1102_v6 = vpop.permute.xlu0 %1101 }
0x1bff   :  { %2031 = vmatmul.mubr.msk.bf16.vlgmr.msra.gmra.mrb[28].mxu1 %vm227_vm5, %v1102_v6 }
0x1c00   :  { %2043 = vmatpush3.bf16.msra.mxu1 %v2615_v31  ;;  %2046 = vmatprep.mubr.msk.bf16.mxu1 %vm2262_vm0, %v2261_v0 }
0x1c01   :  { %2044 = vmatprep.subr.bf16.mxu1 %v2261_v0 }
0x1c04   :  { %2045 = vmatpush3.bf16.msra.mxu1 %v2625_v34 }
0x1c05   :  { %2058 = vmatprep.subr.bf16.mxu1 %v2261_v0 }
0x1cd2   :  { %v1140_v9 = vpop.f32.mrb[28].mxu1 }
0x1cd3   :  { %v1146_v11 = vadd.f32 %v1140_v9, %v877_v7  ;;  %v2032_v18 = vpop.f32.mrb[29].mxu1 }
0x1cd4   :  { %v1143_v21 = vpop.f32.mrb[30].mxu1 }
0x1cd5   :  { %v1147_v5 = vmul.f32 %v1146_v11, %v2437_v27  ;;  %v2033_v23 = vpop.f32.mrb[31].mxu1 }
0x1cd7   :  { %2189 = vtanh.f32 %v1147_v5  ;;  %v890_v5 = vadd.f32 %v2701_v13, %v2649_v40 }
0x1ce1   :  { %v2190_v25 = vpop.eup %2189 }
0x1ce2   :  { %v1149_v26 = vmul.f32 0.5, %v2190_v25 }
0x1ce4   :  { %v1150_v45 = vadd.f32 0.5, %v1149_v26 }
0x1ce6   :  { %v1151_v10 = vsel %vm2428_vm4, %v2190_v25, %v1150_v45 }
0x1ce7   :  { %1154 = vrot.lane.b32.xlu1 %v1151_v10, %s2265_s2  ;;  %v1152_v44 = vmul.f32 %v1151_v10, %v1092_v1 }
0x1d59   :  { %v1155_v28 = vpop.permute.xlu1 %1154 }
0x1d5a   :  { %v1157_v29 = vmul.f32 %v1155_v28, %v1151_v10 }
0x1d5c   :  { %1159 = vrot.lane.b32.xlu0 %v1157_v29, %s2266_s29 }
0x1dce   :  { %v1160_v30 = vpop.permute.xlu0 %1159 }
0x1dcf   :  { %v1162_v33 = vadd.f32 %v1160_v30, %v1152_v44 }
0x1dd1   :  { %2191 = vtanh.f32 %v1162_v33 }
0x1ddb   :  { %v2192_v41 = vpop.eup %2191 }
0x1ddc   :  { %1165 = vrot.lane.b32.xlu1 %v2192_v41, %s2265_s2 }
0x1e4e   :  { %v1166_v62 = vpop.permute.xlu1 %1165 }
0x1e4f   :  { %v1168_v35 = vmul.f32 %v1166_v62, %v1151_v10 }
0x1e51   :  { %v1169_v32 = vpack.c.bf16 %v1168_v35, %v1168_v35 }
0x1e53   :  { %1171 = vrot.lane.b32.xlu0 %v1169_v32, %s2266_s29 }
0x1ec5   :  { %v1172_v51 = vpop.permute.xlu0 %1171 }
0x1ec6   :  { %2039 = vmatmul.mubr.msk.bf16.vlgmr.msra.gmra.mrb[32].mxu0 %vm227_vm5, %v1172_v51 }
0x1ec7   :  { %2051 = vmatpush3.bf16.msra.mxu0 %v2615_v31  ;;  %2054 = vmatprep.mubr.msk.bf16.mxu0 %vm2262_vm0, %v2261_v0 }
0x1ec8   :  { %2052 = vmatprep.subr.bf16.mxu0 %v2261_v0 }
0x1ecb   :  { %2053 = vmatpush3.bf16.msra.mxu0 %v2625_v34 }
0x1f99   :  { %v1210_v20 = vpop.f32.mrb[32].mxu0 }
0x1f9a   :  { %v1216_v16 = vadd.f32 %v1210_v20, %v882_v36  ;;  %v2040_v37 = vpop.f32.mrb[33].mxu0 }
0x1f9b   :  { %v1213_v38 = vpop.f32.mrb[34].mxu0 }
0x1f9c   :  { %v1217_v39 = vmul.f32 %v1216_v16, %v2437_v27  ;;  %v2041_v42 = vpop.f32.mrb[35].mxu0  ;;  %v893_v38 = vadd.f32 %v2705_v47, %v2649_v40 }
0x1f9e   :  { %2193 = vtanh.f32 %v1217_v39 }
0x1fa8   :  { %v2194_v43 = vpop.eup %2193 }
0x1fa9   :  { %v1219_v15 = vmul.f32 0.5, %v2194_v43 }
0x1fab   :  { %v1220_v46 = vadd.f32 0.5, %v1219_v15 }
0x1fad   :  { %v1221_v19 = vsel %vm2428_vm4, %v2194_v43, %v1220_v46 }
0x1fae   :  { %1224 = vrot.lane.b32.xlu1 %v1221_v19, %s2265_s2  ;;  %v1222_v17 = vmul.f32 %v1221_v19, %v1162_v33 }
0x2020   :  { %v1225_v14 = vpop.permute.xlu1 %1224 }
0x2021   :  { %v1227_v49 = vmul.f32 %v1225_v14, %v1221_v19 }
0x2023   :  { %1229 = vrot.lane.b32.xlu0 %v1227_v49, %s2266_s29 }
0x2095   :  { %v1230_v50 = vpop.permute.xlu0 %1229 }
0x2096   :  { %v1232_v52 = vadd.f32 %v1230_v50, %v1222_v17 }
0x2098   :  { %2195 = vtanh.f32 %v1232_v52 }
0x20a2   :  { %v2196_v53 = vpop.eup %2195 }
0x20a3   :  { %1235 = vrot.lane.b32.xlu1 %v2196_v53, %s2265_s2 }
0x2115   :  { %v1236_v54 = vpop.permute.xlu1 %1235 }
0x2116   :  { %v1238_v55 = vmul.f32 %v1236_v54, %v1221_v19 }
0x2118   :  { %v1239_v56 = vpack.c.bf16 %v1238_v55, %v1238_v55  ;;  %v1450_v55 = vld [vmem:[%s2862_s6 + $0x8] sm:$0xff] }
0x211a   :  { %1241 = vrot.lane.b32.xlu0 %v1239_v56, %s2266_s29  ;;  %v2267_v56 = vmov 0.0|0.0  }
0x211b   :  { %2110 = vmatprep.subr.bf16.mxu0 %v2267_v56 }
0x218c   :  { %v1242_v57 = vpop.permute.xlu0 %1241 }
0x218d   :  { %2047 = vmatmul.mubr.msk.bf16.vlgmr.msra.gmra.mrb[32].mxu1 %vm227_vm5, %v1242_v57 }
0x218e   :  { %2059 = vmatpush3.bf16.msra.mxu1 %v2615_v31  ;;  %2062 = vmatprep.mubr.msk.bf16.mxu1 %vm2262_vm0, %v2261_v0 }
0x218f   :  { %2060 = vmatprep.subr.bf16.mxu1 %v2261_v0 }
0x2192   :  { %2061 = vmatpush3.bf16.msra.mxu1 %v2625_v34 }
0x2193   :  { %2116 = vmatprep.subr.bf16.mxu1 %v2267_v56 }
0x2260   :  { %v1280_v58 = vpop.f32.mrb[32].mxu1 }
0x2261   :  { %v1286_v59 = vadd.f32 %v1280_v58, %v885_v24  ;;  %v2048_v60 = vpop.f32.mrb[33].mxu1  ;;  %v1452_v24 = vld [vmem:[%s2862_s6 + $0x18] sm:$0xff] }
0x2262   :  { %v1283_v61 = vpop.f32.mrb[34].mxu1  ;;  %v2114_v58 = vpack.c.bf16 %v1452_v24, %v1451_v22  ;;  %v1536_v60 = vld [vmem:[%s2864_s8] sm:$0xff] }
0x2263   :  { %v1287_v8 = vmul.f32 %v1286_v59, %v2437_v27  ;;  %v2049_v63 = vpop.f32.mrb[35].mxu1  ;;  %v1537_v61 = vld [vmem:[%s2864_s8 + $0x8] sm:$0xff] }
0x2265   :  { %2197 = vtanh.f32 %v1287_v8  ;;  %v2117_v8 = vpack.c.bf16 %v1537_v61, %v1536_v60 }
0x226f   :  { %v2198_v1 = vpop.eup %2197 }
0x2270   :  { %v1289_v31 = vmul.f32 0.5, %v2198_v1 }
0x2272   :  { %v1290_v2 = vadd.f32 0.5, %v1289_v31 }
0x2274   :  { %v1291_v3 = vsel %vm2428_vm4, %v2198_v1, %v1290_v2  ;;  %v1538_v2 = vld [vmem:[%s2864_s8 + $0x10] sm:$0xff] }
0x2275   :  { %1294 = vrot.lane.b32.xlu1 %v1291_v3, %s2265_s2  ;;  %v1292_v48 = vmul.f32 %v1291_v3, %v1232_v52 }
0x22e7   :  { %v1295_v34 = vpop.permute.xlu1 %1294 }
0x22e8   :  { %v1297_v12 = vmul.f32 %v1295_v34, %v1291_v3 }
0x22ea   :  { %1299 = vrot.lane.b32.xlu0 %v1297_v12, %s2266_s29  ;;  %v1621_v12 = vld [vmem:[%s2866_s10] sm:$0xff] }
0x235c   :  { %v1300_v4 = vpop.permute.xlu0 %1299 }
0x235d   :  { %v1302_v6 = vadd.f32 %v1300_v4, %v1292_v48  ;;  %v1622_v48 = vld [vmem:[%s2866_s10 + $0x8] sm:$0xff] }
0x235e   :  { %v2123_v4 = vpack.c.bf16 %v1622_v48, %v1621_v12 }
0x235f   :  { %2199 = vtanh.f32 %v1302_v6 }
0x2369   :  { %v2200_v7 = vpop.eup %2199 }
0x236a   :  { %1305 = vrot.lane.b32.xlu1 %v2200_v7, %s2265_s2 }
0x23dc   :  { %v1306_v9 = vpop.permute.xlu1 %1305 }
0x23dd   :  { %v1308_v11 = vmul.f32 %v1306_v9, %v1291_v3  ;;  %v1539_v3 = vld [vmem:[%s2864_s8 + $0x18] sm:$0xff] }
0x23de   :  { %v2120_v34 = vpack.c.bf16 %v1539_v3, %v1538_v2 }
0x23df   :  { %v1309_v18 = vpack.c.bf16 %v1308_v11, %v1308_v11 }
0x23e1   :  { %1311 = vrot.lane.b32.xlu0 %v1309_v18, %s2266_s29 }
0x2453   :  { %v1312_v21 = vpop.permute.xlu0 %1311 }
0x2454   :  { %2055 = vmatmul.mubr.msk.bf16.vlgmr.msra.gmra.mrb[36].mxu0 %vm227_vm5, %v1312_v21  ;;  %v1623_v21 = vld [vmem:[%s2866_s10 + $0x10] sm:$0xff] }
0x2455   :  { %2074 = vmatprep.mubr.msk.f32.mxu0 %vm2262_vm0, %v2261_v0 }
0x2527   :  { %v1350_v23 = vpop.f32.mrb[36].mxu0 }
0x2528   :  { %v1356_v25 = vadd.f32 %v1350_v23, %v890_v5  ;;  %v2056_v26 = vpop.f32.mrb[37].mxu0  ;;  %v1624_v5 = vld [vmem:[%s2866_s10 + $0x18] sm:$0xff] }
0x2529   :  { %v1353_v45 = vpop.f32.mrb[38].mxu0  ;;  %v2126_v23 = vpack.c.bf16 %v1624_v5, %v1623_v21  ;;  %v1707_v26 = vld [vmem:[%s2868_s12 + $0x8] sm:$0xff] }
0x252a   :  { %v1357_v10 = vmul.f32 %v1356_v25, %v2437_v27  ;;  %v2057_v28 = vpop.f32.mrb[39].mxu0  ;;  %v1706_v25 = vld [vmem:[%s2868_s12] sm:$0xff] }
0x252b   :  { %v2129_v45 = vpack.c.bf16 %v1707_v26, %v1706_v25 }
0x252c   :  { %2201 = vtanh.f32 %v1357_v10 }
0x2536   :  { %v2202_v29 = vpop.eup %2201 }
0x2537   :  { %v1359_v44 = vmul.f32 0.5, %v2202_v29 }
0x2539   :  { %v1360_v30 = vadd.f32 0.5, %v1359_v44 }
0x253b   :  { %v1361_v33 = vsel %vm2428_vm4, %v2202_v29, %v1360_v30  ;;  %v1708_v30 = vld [vmem:[%s2868_s12 + $0x10] sm:$0xff] }
0x253c   :  { %1364 = vrot.lane.b32.xlu1 %v1361_v33, %s2265_s2  ;;  %v1362_v13 = vmul.f32 %v1361_v33, %v1302_v6  ;;  %v1829_v6 = vld [vmem:[#allocation4] ss:$0 sm:$0xff] }
0x25ae   :  { %v1365_v41 = vpop.permute.xlu1 %1364 }
0x25af   :  { %v1367_v62 = vmul.f32 %v1365_v41, %v1361_v33 }
0x25b1   :  { %1369 = vrot.lane.b32.xlu0 %v1367_v62, %s2266_s29  ;;  %v1833_v62 = vld [vmem:[%s2867_s11] ss:$0 sm:$0xff] }
0x2623   :  { %v1370_v35 = vpop.permute.xlu0 %1369 }
0x2624   :  { %v1372_v32 = vadd.f32 %v1370_v35, %v1362_v13 }
0x2626   :  { %2203 = vtanh.f32 %v1372_v32 }
0x2630   :  { %v2204_v51 = vpop.eup %2203 }
0x2631   :  { %1375 = vrot.lane.b32.xlu1 %v2204_v51, %s2265_s2 }
0x26a3   :  { %v1376_v36 = vpop.permute.xlu1 %1375 }
0x26a4   :  { %v1378_v20 = vmul.f32 %v1376_v36, %v1361_v33  ;;  %v1709_v33 = vld [vmem:[%s2868_s12 + $0x18] sm:$0xff]  ;;  %v1835_v36 = vld [vmem:[%s2869_s13] ss:$0 sm:$0xff] }
0x26a5   :  { %v2132_v41 = vpack.c.bf16 %v1709_v33, %v1708_v30 }
0x26a6   :  { %v1379_v16 = vpack.c.bf16 %v1378_v20, %v1378_v20 }
0x26a8   :  { %1381 = vrot.lane.b32.xlu0 %v1379_v16, %s2266_s29 }
0x271a   :  { %v1382_v37 = vpop.permute.xlu0 %1381 }
0x271b   :  { %2063 = vmatmul.mubr.msk.bf16.vlgmr.msra.gmra.mrb[36].mxu1 %vm227_vm5, %v1382_v37 }
0x271c   :  { %2085 = vmatprep.mubr.msk.f32.mxu1 %vm2262_vm0, %v2261_v0  ;;  %2118 = vmatpush3.bf16.msra.mxu1 %v2117_v8 }
0x271d   :  { %2119 = vmatprep.subr.bf16.mxu1 %v2267_v56 }
0x2720   :  { %2121 = vmatpush3.bf16.msra.mxu1 %v2120_v34 }
0x2721   :  { %2128 = vmatprep.subr.bf16.mxu1 %v2267_v56 }
0x27ee   :  { %v1420_v39 = vpop.f32.mrb[36].mxu1 }
0x27ef   :  { %v1426_v42 = vadd.f32 %v1420_v39, %v893_v38  ;;  %v2064_v43 = vpop.f32.mrb[37].mxu1 }
0x27f0   :  { %v1423_v15 = vpop.f32.mrb[38].mxu1 }
0x27f1   :  { %v1427_v46 = vmul.f32 %v1426_v42, %v2437_v27  ;;  %v2065_v19 = vpop.f32.mrb[39].mxu1  ;;  %v1449_v27 = vld [vmem:[%s2862_s6] sm:$0xff] }
0x27f2   :  { %v2111_v57 = vpack.c.bf16 %v1450_v55, %v1449_v27 }
0x27f3   :  { %2205 = vtanh.f32 %v1427_v46 }
0x27f4   :  { %2112 = vmatpush3.bf16.msra.mxu0 %v2111_v57 }
0x27f5   :  { %2113 = vmatprep.subr.bf16.mxu0 %v2267_v56 }
0x27f8   :  { %2115 = vmatpush3.bf16.msra.mxu0 %v2114_v58 }
0x27f9   :  { %2122 = vmatprep.subr.bf16.mxu0 %v2267_v56 }
0x27fd   :  { %v2206_v14 = vpop.eup %2205 }
0x27fe   :  { %v1429_v49 = vmul.f32 0.5, %v2206_v14 }
0x2800   :  { %v1430_v17 = vadd.f32 0.5, %v1429_v49 }
0x2802   :  { %v1431_v50 = vsel %vm2428_vm4, %v2206_v14, %v1430_v17 }
0x2803   :  { %1434 = vrot.lane.b32.xlu1 %v1431_v50, %s2265_s2  ;;  %v1432_v40 = vmul.f32 %v1431_v50, %v1372_v32 }
0x2875   :  { %v1435_v52 = vpop.permute.xlu1 %1434 }
0x2876   :  { %v1437_v53 = vmul.f32 %v1435_v52, %v1431_v50 }
0x2878   :  { %1439 = vrot.lane.b32.xlu0 %v1437_v53, %s2266_s29 }
0x28ea   :  { %v1440_v47 = vpop.permute.xlu0 %1439 }
0x28eb   :  { %v1442_v54 = vadd.f32 %v1440_v47, %v1432_v40 }
0x28ed   :  { %2207 = vtanh.f32 %v1442_v54 }
0x28f7   :  { %v2208_v59 = vpop.eup %2207 }
0x28f8   :  { %1445 = vrot.lane.b32.xlu1 %v2208_v59, %s2265_s2 }
0x296a   :  { %v1446_v63 = vpop.permute.xlu1 %1445 }
0x296b   :  { %v1448_v1 = vmul.f32 %v1446_v63, %v1431_v50 }
0x296d   :  { %1461 = vrot.lane.b32.xlu0 %v1448_v1, %s2266_s29 }
0x29df   :  { %v1462_v31 = vpop.permute.xlu0 %1461 }
0x29e0   :  { %2075 = vmatmul.mubr.msk.f32.vlgmr.msra.gmra.mrb[40].mxu0 %vm227_vm5, %v1462_v31 }
0x29e1   :  { %2096 = vmatprep.mubr.msk.f32.mxu0 %vm2262_vm0, %v2261_v0  ;;  %2124 = vmatpush3.bf16.msra.mxu0 %v2123_v4 }
0x29e2   :  { %2125 = vmatprep.subr.bf16.mxu0 %v2267_v56 }
0x29e5   :  { %2127 = vmatpush3.bf16.msra.mxu0 %v2126_v23 }
0x2ab3   :  { %v1531_v7 = vpop.f32.mrb[40].mxu0 }
0x2ab4   :  { %v1532_v9 = vadd.f32 %v1829_v6, %v1531_v7  ;;  %v2076_v11 = vpop.f32.mrb[41].mxu0 }
0x2ab6   :  { %v1535_v18 = vmax.f32 %v1532_v9, 0.0 }
0x2ab8   :  { %2086 = vmatmul.mubr.msk.f32.vlgmr.msra.gmra.mrb[40].mxu1 %vm227_vm5, %v1535_v18 }
0x2ab9   :  { %2107 = vmatprep.mubr.msk.f32.mxu1 %vm2262_vm0, %v2261_v0  ;;  %2130 = vmatpush3.bf16.msra.mxu1 %v2129_v45  ;;  %v1831_v0 = vld [vmem:[%s2865_s9] ss:$0 sm:$0xff] }
0x2aba   :  { %2131 = vmatprep.subr.bf16.mxu1 %v2267_v56 }
0x2abd   :  { %2133 = vmatpush3.bf16.msra.mxu1 %v2132_v41 }
0x2b8b   :  { %v1616_v10 = vpop.f32.mrb[40].mxu1 }
0x2b8c   :  { %v1617_v28 = vadd.f32 %v1831_v0, %v1616_v10  ;;  %v2087_v29 = vpop.f32.mrb[41].mxu1 }
0x2b8e   :  { %v1620_v44 = vmax.f32 %v1617_v28, 0.0 }
0x2b90   :  { %2097 = vmatmul.mubr.msk.f32.vlgmr.msra.gmra.mrb[42].mxu0 %vm227_vm5, %v1620_v44 }
0x2c63   :  { %v1701_v13 = vpop.f32.mrb[42].mxu0 }
0x2c64   :  { %v1702_v35 = vadd.f32 %v1833_v62, %v1701_v13  ;;  %v2098_v32 = vpop.f32.mrb[43].mxu0 }
0x2c66   :  { %v1705_v51 = vmax.f32 %v1702_v35, 0.0 }
0x2c68   :  { %2108 = vmatmul.mubr.msk.f32.vlgmr.msra.gmra.mrb[42].mxu1 %vm227_vm5, %v1705_v51 }
0x2d3b   :  { %v1786_v20 = vpop.f32.mrb[42].mxu1 }
0x2d3c   :  { %v1787_v16 = vadd.f32 %v1835_v36, %v1786_v20  ;;  %v2109_v37 = vpop.f32.mrb[43].mxu1 }
0x2d3e   :  { %1791 = vst.msk [vmem:[%s2871_s15] sm:$0xff] %vm1790_vm6, %v1787_v16 }
0x2d3f   :  { %1796 = vsyncpa [#allocation3], 1 }
0x2d40   :  { %1797 = vsyncpa [#allocation5], 1 }

</bundles_post_ra>
